<compile_context>
chip_gen: v7x
topology: tpu7x:2x2x1
jax: 0.10.0
libtpu: 0.0.40
codegen_flags: <defaults>
</compile_context>

<pallas_src>
import functools

import jax
import jax.numpy as jnp
from jax import lax
from jax.experimental import pallas as pl
from jax.experimental.pallas import tpu as pltpu


def _round_up(x, m):
    return (x + m - 1) // m * m


# ----------------------------------------------------------------------------
# Pallas kernel: one grid step == one block of `bblk` samples.
# Activation rows are ordered t*bblk + j (position t, sample j of the block).
# ----------------------------------------------------------------------------
def classifier_kernel(x_ref, mm_ref, vec_ref, out_ref, *, cfg):
    bblk = cfg["bblk"]
    f32 = jnp.float32

    # --- Layer 0: depthwise + pointwise fused into a single f32 GEMM on im2col input.
    xcol = x_ref[0]                                                    # (L1*bblk, K*Cin) f32
    w0 = vec_ref[cfg["w0_off"]:cfg["w0_off"] + cfg["w0_rows"], 0:cfg["w0_cols"]]
    fb0 = vec_ref[cfg["fb0_off"]:cfg["fb0_off"] + 1, 0:cfg["w0_cols"]]
    x0 = jnp.dot(xcol, w0, preferred_element_type=f32) + fb0
    x0 = jnp.maximum(x0, 0.0)                                          # (L1*bblk, 32) f32

    # Per-position activation list (no concatenates anywhere in the kernel).
    xs = [x0[i * bblk:(i + 1) * bblk, :] for i in range(cfg["l1"])]

    # --- Conv layers 1..3: depthwise = VPU FMA on per-position blocks (pad taps skipped
    #     statically), pointwise (+ fused bias) = per-position MXU GEMM, then ReLU.
    for lc in cfg["convs"]:
        k, ci, co = lc["k"], lc["cin"], lc["cout"]
        dw_w = vec_ref[lc["dw_off"]:lc["dw_off"] + k, 0:ci]            # (K, Ci) f32
        # Hoisted per-tap broadcasts (emitted once per tap, not once per position).
        dw_b = [jnp.broadcast_to(dw_w[j:j + 1, :], (bblk, ci)) for j in range(k)]
        w_pw = mm_ref[lc["pw_off"]:lc["pw_off"] + ci, 0:co]            # (Ci, Co) bf16
        fb = jnp.broadcast_to(
            vec_ref[lc["fb_off"]:lc["fb_off"] + 1, 0:co], (bblk, co))  # hoisted bias bcast
        ys = []
        for t in range(lc["lout"]):
            acc = None
            for j in range(k):
                i = lc["stride"] * t + j - lc["pad"]
                if 0 <= i < lc["lin"]:                    # static zero-padding handling
                    c = xs[i] * dw_b[j]
                    acc = c if acc is None else acc + c
            y = jnp.dot(acc.astype(jnp.bfloat16), w_pw,
                        preferred_element_type=f32) + fb
            ys.append(jnp.maximum(y, 0.0))                             # (bblk, Co) f32
        xs = ys

    # --- Flatten is a no-op (final conv length == 1): xs[0] is (bblk, 256).
    # --- MLP head (dropout == identity in inference).
    x = xs[0]
    for lm in cfg["mlps"]:
        w = mm_ref[lm["w_off"]:lm["w_off"] + lm["win"], 0:lm["wout"]]
        b = vec_ref[lm["b_off"]:lm["b_off"] + 1, 0:lm["wout"]]
        x = jnp.dot(x.astype(jnp.bfloat16), w, preferred_element_type=f32) + b
        if lm["relu"]:
            x = jnp.maximum(x, 0.0)

    out_ref[...] = x.astype(out_ref.dtype)                             # (bblk, out_pad)


# ----------------------------------------------------------------------------
# Parameter construction (deterministic, torch-shaped) and kernel-layout packing
# ----------------------------------------------------------------------------
def init_params(key, raw_ni, no):
    cfg = [(raw_ni, 32, 5, 2, 3), (32, 64, 5, 4, 2), (64, 128, 5, 4, 2), (128, 256, 5, 4, 2)]
    keys = iter(jax.random.split(key, 32))
    convs = []
    for (ni, co, k, s, pad) in cfg:
        w_dw = jax.random.normal(next(keys), (ni, 1, k), jnp.float32) * (1.0 / k) ** 0.5
        b_dw = jax.random.normal(next(keys), (ni,), jnp.float32) * 0.01
        w_pw = jax.random.normal(next(keys), (co, ni, 1), jnp.float32) * (1.0 / ni) ** 0.5
        b_pw = jax.random.normal(next(keys), (co,), jnp.float32) * 0.01
        convs.append((w_dw, b_dw, w_pw, b_pw, k, s, pad))
    lins = []
    for (fi, fo) in [(256, 64), (64, 64), (64, 64), (64, no)]:
        w = jax.random.normal(next(keys), (fo, fi), jnp.float32) * (1.0 / fi) ** 0.5
        b = jax.random.normal(next(keys), (fo,), jnp.float32) * 0.01
        lins.append((w, b))
    return convs, lins


def _kernel_mats(convs, lins):
    """Torch-shaped params -> kernel matrices.

    mm_list  (bf16 slab): [pw1, pw2, pw3, W_l0..W_l3]
    vec_list (f32 slab) : [W0_fused(K*Cin,32), fb0, dw1, fb1, dw2, fb2, dw3, fb3, b_l0..b_l3]
    (depthwise biases are folded into the pointwise bias: fb = b_dw @ pw + b_pw; valid
    because _SepConv1d has no nonlinearity between depthwise and pointwise)
    """
    w_dw0, b_dw0, w_pw0, b_pw0, k0, _s0, _p0 = convs[0]
    cin = w_dw0.shape[0]
    dw0 = w_dw0[:, 0, :]                                  # (Cin, K)
    pw0 = w_pw0[:, :, 0].T                                # (Cin, 32)
    w0 = (dw0.T[:, :, None] * pw0[None, :, :]).reshape(k0 * cin, pw0.shape[1])
    fb0 = b_dw0 @ pw0 + b_pw0
    mm_list, vec_list, conv_ksp = [], [w0, fb0[None, :]], []
    for (w_dw, b_dw, w_pw, b_pw, k, s, p) in convs[1:]:
        dw = w_dw[:, 0, :].T                              # (K, Ci)
        pw = w_pw[:, :, 0].T                              # (Ci, Co)
        fb = b_dw @ pw + b_pw
        mm_list.append(pw)
        vec_list.extend([dw, fb[None, :]])
        conv_ksp.append((k, s, p))
    for (w, b) in lins:
        mm_list.append(w.T)                               # (in, out)
        vec_list.append(b[None, :])
    return mm_list, vec_list, conv_ksp


def _pack_slab(arrays, dtype, min_width, align):
    """Pack 2-D arrays into one (rows, width) slab; each array starts at an `align`-multiple row."""
    width = _round_up(max([a.shape[1] for a in arrays] + [min_width]), 128)
    offs, r = [], 0
    for a in arrays:
        offs.append(r)
        r += _round_up(a.shape[0], align)
    slab = jnp.zeros((_round_up(r, align), width), dtype)
    for a, o in zip(arrays, offs):
        slab = slab.at[o:o + a.shape[0], :a.shape[1]].set(a.astype(dtype))
    return slab, offs


# ----------------------------------------------------------------------------
# Pallas wrapper
# ----------------------------------------------------------------------------
def classifier_forward(x_ncl, convs, lins, no, *, block_b=256):
    """Forward pass of Classifier (inference). x_ncl: (B, raw_ni, L) PyTorch NCW layout.

    block_b: samples per grid step.  Per-step VMEM is tiny (~2 MB activations + ~0.5 MB
    slabs at block_b=256), so 256 is safe on v5e/v6e/v7x; bblk is additionally capped at
    ~B/2 so the grid keeps >= 2 parallel steps for v7x's 2 TensorCores.
    """
    B, cin, L = x_ncl.shape
    k0, s0, p0 = convs[0][4], convs[0][5], convs[0][6]
    L1 = (L + 2 * p0 - k0) // s0 + 1

    bblk = min(block_b, _round_up(max(1, -(-B // 2)), 8))     # multiple of 8, G >= 2 when possible
    G = pl.cdiv(B, bblk)
    Bp = G * bblk

    # Wrapper-side layout plumbing: NCW -> NLC, zero-pad batch and length, im2col for
    # layer 0, then blocked position-major [g, t*bblk + j, K*Cin] (kept in f32).
    x_nlc = jnp.transpose(x_ncl, (0, 2, 1)).astype(jnp.float32)
    xpad = jnp.pad(x_nlc, ((0, Bp - B), (p0, p0), (0, 0)))
    cols = [xpad[:, k:k + s0 * L1:s0, :] for k in range(k0)]
    xcol = jnp.concatenate(cols, axis=-1)                               # (Bp, L1, K*Cin)
    xcol = xcol.reshape(G, bblk, L1, k0 * cin).transpose(0, 2, 1, 3)
    xcol = xcol.reshape(G, L1 * bblk, k0 * cin)

    # Pack parameters into two resident slabs.
    out_pad = _round_up(no, 128)
    mm_list, vec_list, conv_ksp = _kernel_mats(convs, lins)
    mm_slab, mm_offs = _pack_slab(mm_list, jnp.bfloat16, out_pad, align=16)
    vec_slab, vec_offs = _pack_slab(vec_list, jnp.float32, out_pad, align=8)

    # Static per-layer metadata.
    conv_cfg, lin_len = [], L1
    for idx, (k, s, p) in enumerate(conv_ksp):
        pw = mm_list[idx]
        lout = (lin_len + 2 * p - k) // s + 1
        conv_cfg.append(dict(k=k, stride=s, pad=p, lin=lin_len, lout=lout,
                             cin=pw.shape[0], cout=pw.shape[1],
                             dw_off=vec_offs[2 + 2 * idx],
                             fb_off=vec_offs[3 + 2 * idx],
                             pw_off=mm_offs[idx]))
        lin_len = lout
    assert lin_len == 1, "Flatten + Linear(256, 64) requires the last conv length == 1"

    n_conv = len(conv_ksp)
    mlp_cfg = []
    for j in range(len(lins)):
        w = mm_list[n_conv + j]
        last = j == len(lins) - 1
        mlp_cfg.append(dict(w_off=mm_offs[n_conv + j], win=w.shape[0],
                            wout=out_pad if last else w.shape[1],
                            b_off=vec_offs[2 + 2 * n_conv + j], relu=not last))

    cfg = dict(bblk=bblk, l1=L1,
               w0_off=vec_offs[0], w0_rows=vec_list[0].shape[0], w0_cols=vec_list[0].shape[1],
               fb0_off=vec_offs[1], convs=conv_cfg, mlps=mlp_cfg)

    # Advisory cost estimate so XLA can overlap the wrapper-side im2col with the kernel.
    flops = 2 * L1 * Bp * (k0 * cin) * 32
    for lc in conv_cfg:
        flops += 2 * lc["lout"] * Bp * lc["k"] * lc["cin"]          # depthwise FMAs
        flops += 2 * lc["lout"] * Bp * lc["cin"] * lc["cout"]       # pointwise GEMMs
    for lm in mlp_cfg:
        flops += 2 * Bp * lm["win"] * lm["wout"]
    bytes_accessed = (xcol.size * 4 + mm_slab.size * 2 + vec_slab.size * 4
                      + Bp * out_pad * 4)
    cost = pl.CostEstimate(flops=flops, transcendentals=0, bytes_accessed=bytes_accessed)

    out = pl.pallas_call(
        functools.partial(classifier_kernel, cfg=cfg),
        out_shape=jax.ShapeDtypeStruct((Bp, out_pad), jnp.float32),
        grid=(G,),
        in_specs=[
            pl.BlockSpec((1, L1 * bblk, k0 * cin), lambda g: (g, 0, 0)),
            pl.BlockSpec(mm_slab.shape, lambda g: (0, 0)),   # param slabs resident across grid
            pl.BlockSpec(vec_slab.shape, lambda g: (0, 0)),
        ],
        out_specs=pl.BlockSpec((bblk, out_pad), lambda g: (g, 0)),
        compiler_params=pltpu.CompilerParams(dimension_semantics=("parallel",)),
        cost_estimate=cost,
    )(xcol, mm_slab, vec_slab)
    return out[:B, :no]


# ----------------------------------------------------------------------------
# Pure-JAX reference (NCW, mirrors PyTorch semantics) for validation
# ----------------------------------------------------------------------------
def ref_forward(x_ncl, convs, lins):
    y = x_ncl.astype(jnp.float32)
    for (w_dw, b_dw, w_pw, b_pw, _k, s, pad) in convs:
        ni = w_dw.shape[0]
        y = lax.conv_general_dilated(y, w_dw, window_strides=(s,), padding=[(pad, pad)],
                                     feature_group_count=ni,
                                     dimension_numbers=("NCH", "OIH", "NCH")) + b_dw[None, :, None]
        y = lax.conv_general_dilated(y, w_pw, window_strides=(1,), padding=[(0, 0)],
                                     dimension_numbers=("NCH", "OIH", "NCH")) + b_pw[None, :, None]
        y = jnp.maximum(y, 0.0)
    y = y.reshape(y.shape[0], -1)
    for (w, b), r in zip(lins, (True, True, True, False)):
        y = y @ w.T + b[None, :]
        if r:
            y = jnp.maximum(y, 0.0)
    return y


if __name__ == "__main__":
    key = jax.random.PRNGKey(0)
    k_x, k_p = jax.random.split(key)

    # Small demo shapes: Linear(256, 64) after Flatten requires the last conv length to be
    # 1 -> input length 64.  B=24 exercises a 2-step grid (bblk=16) plus batch padding.
    B, raw_ni, L, no = 24, 4, 64, 3
    x = jax.random.normal(k_x, (B, raw_ni, L), jnp.float32)           # PyTorch NCW layout
    convs, lins = init_params(k_p, raw_ni, no)

    out = classifier_forward(x, convs, lins, no)
    out = jax.block_until_ready(out)

    ref = ref_forward(x, convs, lins)
    assert out.shape == (B, no)
    # bf16 matmul operands after layer 0 (f32 accumulation) vs f32 reference -> loosened tol.
    if not jnp.allclose(out, ref, rtol=5e-2, atol=5e-2):
        err = float(jnp.max(jnp.abs(out - ref)))
        raise AssertionError(f"Pallas kernel output mismatch (max abs err {err:.4f})")

    # TODO(synk): training-mode nn.Dropout (stochastic masking) is not implemented;
    # forward here matches eval()/inference semantics where dropout is identity.
    print("KERNEL_OK")
</pallas_src>

<mosaic_0001>
module attributes {stable_mosaic.version = 11 : i64} {
  func.func @classifier_kernel(%arg0: i32, %arg1: memref<1x528x20xf32, #tpu.memory_space<vmem>>, %arg2: memref<672x256xbf16, #tpu.memory_space<vmem>>, %arg3: memref<112x256xf32, #tpu.memory_space<vmem>>, %arg4: memref<16x128xf32, #tpu.memory_space<vmem>>) attributes {dimension_semantics = [#tpu.dimension_semantics<parallel>], iteration_bounds = array<i64: 2>, scalar_prefetch = 0 : i64, scratch_operands = 0 : i64, tpu.core_type = #tpu.core_type<tc>, window_params = [{transform_indices = @transform_0, window_bounds = array<i64: 1, 528, 20>}, {pipeline_mode = #tpu.pipeline_mode<synchronous>, transform_indices = @transform_1, window_bounds = array<i64: 672, 256>}, {pipeline_mode = #tpu.pipeline_mode<synchronous>, transform_indices = @transform_2, window_bounds = array<i64: 112, 256>}, {transform_indices = @transform_3, window_bounds = array<i64: 16, 128>}]} {
    %c0 = arith.constant 0 : index
    %c0_0 = arith.constant 0 : index
    %c0_1 = arith.constant 0 : index
    %0 = vector.load %arg1[%c0, %c0_0, %c0_1] : memref<1x528x20xf32, #tpu.memory_space<vmem>>, vector<1x528x20xf32>
    %1 = vector.shape_cast %0 : vector<1x528x20xf32> to vector<528x20xf32>
    %c0_2 = arith.constant 0 : index
    %c0_3 = arith.constant 0 : index
    %2 = vector.load %arg3[%c0_2, %c0_3] : memref<112x256xf32, #tpu.memory_space<vmem>>, vector<20x32xf32>
    %c24 = arith.constant 24 : index
    %c0_4 = arith.constant 0 : index
    %3 = vector.load %arg3[%c24, %c0_4] : memref<112x256xf32, #tpu.memory_space<vmem>>, vector<1x32xf32>
    %cst = arith.constant dense<0.000000e+00> : vector<528x32xf32>
    %4 = tpu.matmul %1, %2, %cst {dimension_numbers = #tpu.dot_dimension_numbers<[1], [0], [0], [1], [0, 0, 1, 1], [], []>} : vector<528x20xf32>, vector<20x32xf32>, vector<528x32xf32> -> vector<528x32xf32>
    %5 = vector.broadcast %3 : vector<1x32xf32> to vector<528x32xf32>
    %6 = arith.addf %4, %5 : vector<528x32xf32>
    %cst_5 = arith.constant 0.000000e+00 : f32
    %7 = vector.broadcast %cst_5 : f32 to vector<528x32xf32>
    %8 = arith.maximumf %6, %7 : vector<528x32xf32>
    %9 = vector.extract_strided_slice %8 {offsets = [0, 0], sizes = [16, 32], strides = [1, 1]} : vector<528x32xf32> to vector<16x32xf32>
    %10 = vector.extract_strided_slice %8 {offsets = [16, 0], sizes = [16, 32], strides = [1, 1]} : vector<528x32xf32> to vector<16x32xf32>
    %11 = vector.extract_strided_slice %8 {offsets = [32, 0], sizes = [16, 32], strides = [1, 1]} : vector<528x32xf32> to vector<16x32xf32>
    %12 = vector.extract_strided_slice %8 {offsets = [48, 0], sizes = [16, 32], strides = [1, 1]} : vector<528x32xf32> to vector<16x32xf32>
    %13 = vector.extract_strided_slice %8 {offsets = [64, 0], sizes = [16, 32], strides = [1, 1]} : vector<528x32xf32> to vector<16x32xf32>
    %14 = vector.extract_strided_slice %8 {offsets = [80, 0], sizes = [16, 32], strides = [1, 1]} : vector<528x32xf32> to vector<16x32xf32>
    %15 = vector.extract_strided_slice %8 {offsets = [96, 0], sizes = [16, 32], strides = [1, 1]} : vector<528x32xf32> to vector<16x32xf32>
    %16 = vector.extract_strided_slice %8 {offsets = [112, 0], sizes = [16, 32], strides = [1, 1]} : vector<528x32xf32> to vector<16x32xf32>
    %17 = vector.extract_strided_slice %8 {offsets = [128, 0], sizes = [16, 32], strides = [1, 1]} : vector<528x32xf32> to vector<16x32xf32>
    %18 = vector.extract_strided_slice %8 {offsets = [144, 0], sizes = [16, 32], strides = [1, 1]} : vector<528x32xf32> to vector<16x32xf32>
    %19 = vector.extract_strided_slice %8 {offsets = [160, 0], sizes = [16, 32], strides = [1, 1]} : vector<528x32xf32> to vector<16x32xf32>
    %20 = vector.extract_strided_slice %8 {offsets = [176, 0], sizes = [16, 32], strides = [1, 1]} : vector<528x32xf32> to vector<16x32xf32>
    %21 = vector.extract_strided_slice %8 {offsets = [192, 0], sizes = [16, 32], strides = [1, 1]} : vector<528x32xf32> to vector<16x32xf32>
    %22 = vector.extract_strided_slice %8 {offsets = [208, 0], sizes = [16, 32], strides = [1, 1]} : vector<528x32xf32> to vector<16x32xf32>
    %23 = vector.extract_strided_slice %8 {offsets = [224, 0], sizes = [16, 32], strides = [1, 1]} : vector<528x32xf32> to vector<16x32xf32>
    %24 = vector.extract_strided_slice %8 {offsets = [240, 0], sizes = [16, 32], strides = [1, 1]} : vector<528x32xf32> to vector<16x32xf32>
    %25 = vector.extract_strided_slice %8 {offsets = [256, 0], sizes = [16, 32], strides = [1, 1]} : vector<528x32xf32> to vector<16x32xf32>
    %26 = vector.extract_strided_slice %8 {offsets = [272, 0], sizes = [16, 32], strides = [1, 1]} : vector<528x32xf32> to vector<16x32xf32>
    %27 = vector.extract_strided_slice %8 {offsets = [288, 0], sizes = [16, 32], strides = [1, 1]} : vector<528x32xf32> to vector<16x32xf32>
    %28 = vector.extract_strided_slice %8 {offsets = [304, 0], sizes = [16, 32], strides = [1, 1]} : vector<528x32xf32> to vector<16x32xf32>
    %29 = vector.extract_strided_slice %8 {offsets = [320, 0], sizes = [16, 32], strides = [1, 1]} : vector<528x32xf32> to vector<16x32xf32>
    %30 = vector.extract_strided_slice %8 {offsets = [336, 0], sizes = [16, 32], strides = [1, 1]} : vector<528x32xf32> to vector<16x32xf32>
    %31 = vector.extract_strided_slice %8 {offsets = [352, 0], sizes = [16, 32], strides = [1, 1]} : vector<528x32xf32> to vector<16x32xf32>
    %32 = vector.extract_strided_slice %8 {offsets = [368, 0], sizes = [16, 32], strides = [1, 1]} : vector<528x32xf32> to vector<16x32xf32>
    %33 = vector.extract_strided_slice %8 {offsets = [384, 0], sizes = [16, 32], strides = [1, 1]} : vector<528x32xf32> to vector<16x32xf32>
    %34 = vector.extract_strided_slice %8 {offsets = [400, 0], sizes = [16, 32], strides = [1, 1]} : vector<528x32xf32> to vector<16x32xf32>
    %35 = vector.extract_strided_slice %8 {offsets = [416, 0], sizes = [16, 32], strides = [1, 1]} : vector<528x32xf32> to vector<16x32xf32>
    %36 = vector.extract_strided_slice %8 {offsets = [432, 0], sizes = [16, 32], strides = [1, 1]} : vector<528x32xf32> to vector<16x32xf32>
    %37 = vector.extract_strided_slice %8 {offsets = [448, 0], sizes = [16, 32], strides = [1, 1]} : vector<528x32xf32> to vector<16x32xf32>
    %38 = vector.extract_strided_slice %8 {offsets = [464, 0], sizes = [16, 32], strides = [1, 1]} : vector<528x32xf32> to vector<16x32xf32>
    %39 = vector.extract_strided_slice %8 {offsets = [480, 0], sizes = [16, 32], strides = [1, 1]} : vector<528x32xf32> to vector<16x32xf32>
    %40 = vector.extract_strided_slice %8 {offsets = [496, 0], sizes = [16, 32], strides = [1, 1]} : vector<528x32xf32> to vector<16x32xf32>
    %41 = vector.extract_strided_slice %8 {offsets = [512, 0], sizes = [16, 32], strides = [1, 1]} : vector<528x32xf32> to vector<16x32xf32>
    %c32 = arith.constant 32 : index
    %c0_6 = arith.constant 0 : index
    %42 = vector.load %arg3[%c32, %c0_6] : memref<112x256xf32, #tpu.memory_space<vmem>>, vector<5x32xf32>
    %43 = vector.extract_strided_slice %42 {offsets = [0, 0], sizes = [1, 32], strides = [1, 1]} : vector<5x32xf32> to vector<1x32xf32>
    %44 = vector.shape_cast %43 : vector<1x32xf32> to vector<1x32xf32>
    %45 = vector.broadcast %44 : vector<1x32xf32> to vector<16x32xf32>
    %46 = vector.extract_strided_slice %42 {offsets = [1, 0], sizes = [1, 32], strides = [1, 1]} : vector<5x32xf32> to vector<1x32xf32>
    %47 = vector.shape_cast %46 : vector<1x32xf32> to vector<1x32xf32>
    %48 = vector.broadcast %47 : vector<1x32xf32> to vector<16x32xf32>
    %49 = vector.extract_strided_slice %42 {offsets = [2, 0], sizes = [1, 32], strides = [1, 1]} : vector<5x32xf32> to vector<1x32xf32>
    %50 = vector.shape_cast %49 : vector<1x32xf32> to vector<1x32xf32>
    %51 = vector.broadcast %50 : vector<1x32xf32> to vector<16x32xf32>
    %52 = vector.extract_strided_slice %42 {offsets = [3, 0], sizes = [1, 32], strides = [1, 1]} : vector<5x32xf32> to vector<1x32xf32>
    %53 = vector.shape_cast %52 : vector<1x32xf32> to vector<1x32xf32>
    %54 = vector.broadcast %53 : vector<1x32xf32> to vector<16x32xf32>
    %55 = vector.extract_strided_slice %42 {offsets = [4, 0], sizes = [1, 32], strides = [1, 1]} : vector<5x32xf32> to vector<1x32xf32>
    %56 = vector.shape_cast %55 : vector<1x32xf32> to vector<1x32xf32>
    %57 = vector.broadcast %56 : vector<1x32xf32> to vector<16x32xf32>
    %c0_7 = arith.constant 0 : index
    %c0_8 = arith.constant 0 : index
    %58 = vector.load %arg2[%c0_7, %c0_8] : memref<672x256xbf16, #tpu.memory_space<vmem>>, vector<32x64xbf16>
    %c40 = arith.constant 40 : index
    %c0_9 = arith.constant 0 : index
    %59 = vector.load %arg3[%c40, %c0_9] : memref<112x256xf32, #tpu.memory_space<vmem>>, vector<1x64xf32>
    %60 = vector.shape_cast %59 : vector<1x64xf32> to vector<1x64xf32>
    %61 = vector.broadcast %60 : vector<1x64xf32> to vector<16x64xf32>
    %62 = arith.mulf %9, %51 : vector<16x32xf32>
    %63 = arith.mulf %10, %54 : vector<16x32xf32>
    %64 = arith.addf %62, %63 : vector<16x32xf32>
    %65 = arith.mulf %11, %57 : vector<16x32xf32>
    %66 = arith.addf %64, %65 : vector<16x32xf32>
    %67 = arith.truncf %66 : vector<16x32xf32> to vector<16x32xbf16>
    %cst_10 = arith.constant dense<0.000000e+00> : vector<16x64xf32>
    %68 = tpu.matmul %67, %58, %cst_10 {dimension_numbers = #tpu.dot_dimension_numbers<[1], [0], [0], [1], [0, 0, 1, 1], [], []>} : vector<16x32xbf16>, vector<32x64xbf16>, vector<16x64xf32> -> vector<16x64xf32>
    %69 = arith.addf %68, %61 : vector<16x64xf32>
    %cst_11 = arith.constant 0.000000e+00 : f32
    %70 = vector.broadcast %cst_11 : f32 to vector<16x64xf32>
    %71 = arith.maximumf %69, %70 : vector<16x64xf32>
    %72 = arith.mulf %11, %45 : vector<16x32xf32>
    %73 = arith.mulf %12, %48 : vector<16x32xf32>
    %74 = arith.addf %72, %73 : vector<16x32xf32>
    %75 = arith.mulf %13, %51 : vector<16x32xf32>
    %76 = arith.addf %74, %75 : vector<16x32xf32>
    %77 = arith.mulf %14, %54 : vector<16x32xf32>
    %78 = arith.addf %76, %77 : vector<16x32xf32>
    %79 = arith.mulf %15, %57 : vector<16x32xf32>
    %80 = arith.addf %78, %79 : vector<16x32xf32>
    %81 = arith.truncf %80 : vector<16x32xf32> to vector<16x32xbf16>
    %cst_12 = arith.constant dense<0.000000e+00> : vector<16x64xf32>
    %82 = tpu.matmul %81, %58, %cst_12 {dimension_numbers = #tpu.dot_dimension_numbers<[1], [0], [0], [1], [0, 0, 1, 1], [], []>} : vector<16x32xbf16>, vector<32x64xbf16>, vector<16x64xf32> -> vector<16x64xf32>
    %83 = arith.addf %82, %61 : vector<16x64xf32>
    %cst_13 = arith.constant 0.000000e+00 : f32
    %84 = vector.broadcast %cst_13 : f32 to vector<16x64xf32>
    %85 = arith.maximumf %83, %84 : vector<16x64xf32>
    %86 = arith.mulf %15, %45 : vector<16x32xf32>
    %87 = arith.mulf %16, %48 : vector<16x32xf32>
    %88 = arith.addf %86, %87 : vector<16x32xf32>
    %89 = arith.mulf %17, %51 : vector<16x32xf32>
    %90 = arith.addf %88, %89 : vector<16x32xf32>
    %91 = arith.mulf %18, %54 : vector<16x32xf32>
    %92 = arith.addf %90, %91 : vector<16x32xf32>
    %93 = arith.mulf %19, %57 : vector<16x32xf32>
    %94 = arith.addf %92, %93 : vector<16x32xf32>
    %95 = arith.truncf %94 : vector<16x32xf32> to vector<16x32xbf16>
    %cst_14 = arith.constant dense<0.000000e+00> : vector<16x64xf32>
    %96 = tpu.matmul %95, %58, %cst_14 {dimension_numbers = #tpu.dot_dimension_numbers<[1], [0], [0], [1], [0, 0, 1, 1], [], []>} : vector<16x32xbf16>, vector<32x64xbf16>, vector<16x64xf32> -> vector<16x64xf32>
    %97 = arith.addf %96, %61 : vector<16x64xf32>
    %cst_15 = arith.constant 0.000000e+00 : f32
    %98 = vector.broadcast %cst_15 : f32 to vector<16x64xf32>
    %99 = arith.maximumf %97, %98 : vector<16x64xf32>
    %100 = arith.mulf %19, %45 : vector<16x32xf32>
    %101 = arith.mulf %20, %48 : vector<16x32xf32>
    %102 = arith.addf %100, %101 : vector<16x32xf32>
    %103 = arith.mulf %21, %51 : vector<16x32xf32>
    %104 = arith.addf %102, %103 : vector<16x32xf32>
    %105 = arith.mulf %22, %54 : vector<16x32xf32>
    %106 = arith.addf %104, %105 : vector<16x32xf32>
    %107 = arith.mulf %23, %57 : vector<16x32xf32>
    %108 = arith.addf %106, %107 : vector<16x32xf32>
    %109 = arith.truncf %108 : vector<16x32xf32> to vector<16x32xbf16>
    %cst_16 = arith.constant dense<0.000000e+00> : vector<16x64xf32>
    %110 = tpu.matmul %109, %58, %cst_16 {dimension_numbers = #tpu.dot_dimension_numbers<[1], [0], [0], [1], [0, 0, 1, 1], [], []>} : vector<16x32xbf16>, vector<32x64xbf16>, vector<16x64xf32> -> vector<16x64xf32>
    %111 = arith.addf %110, %61 : vector<16x64xf32>
    %cst_17 = arith.constant 0.000000e+00 : f32
    %112 = vector.broadcast %cst_17 : f32 to vector<16x64xf32>
    %113 = arith.maximumf %111, %112 : vector<16x64xf32>
    %114 = arith.mulf %23, %45 : vector<16x32xf32>
    %115 = arith.mulf %24, %48 : vector<16x32xf32>
    %116 = arith.addf %114, %115 : vector<16x32xf32>
    %117 = arith.mulf %25, %51 : vector<16x32xf32>
    %118 = arith.addf %116, %117 : vector<16x32xf32>
    %119 = arith.mulf %26, %54 : vector<16x32xf32>
    %120 = arith.addf %118, %119 : vector<16x32xf32>
    %121 = arith.mulf %27, %57 : vector<16x32xf32>
    %122 = arith.addf %120, %121 : vector<16x32xf32>
    %123 = arith.truncf %122 : vector<16x32xf32> to vector<16x32xbf16>
    %cst_18 = arith.constant dense<0.000000e+00> : vector<16x64xf32>
    %124 = tpu.matmul %123, %58, %cst_18 {dimension_numbers = #tpu.dot_dimension_numbers<[1], [0], [0], [1], [0, 0, 1, 1], [], []>} : vector<16x32xbf16>, vector<32x64xbf16>, vector<16x64xf32> -> vector<16x64xf32>
    %125 = arith.addf %124, %61 : vector<16x64xf32>
    %cst_19 = arith.constant 0.000000e+00 : f32
    %126 = vector.broadcast %cst_19 : f32 to vector<16x64xf32>
    %127 = arith.maximumf %125, %126 : vector<16x64xf32>
    %128 = arith.mulf %27, %45 : vector<16x32xf32>
    %129 = arith.mulf %28, %48 : vector<16x32xf32>
    %130 = arith.addf %128, %129 : vector<16x32xf32>
    %131 = arith.mulf %29, %51 : vector<16x32xf32>
    %132 = arith.addf %130, %131 : vector<16x32xf32>
    %133 = arith.mulf %30, %54 : vector<16x32xf32>
    %134 = arith.addf %132, %133 : vector<16x32xf32>
    %135 = arith.mulf %31, %57 : vector<16x32xf32>
    %136 = arith.addf %134, %135 : vector<16x32xf32>
    %137 = arith.truncf %136 : vector<16x32xf32> to vector<16x32xbf16>
    %cst_20 = arith.constant dense<0.000000e+00> : vector<16x64xf32>
    %138 = tpu.matmul %137, %58, %cst_20 {dimension_numbers = #tpu.dot_dimension_numbers<[1], [0], [0], [1], [0, 0, 1, 1], [], []>} : vector<16x32xbf16>, vector<32x64xbf16>, vector<16x64xf32> -> vector<16x64xf32>
    %139 = arith.addf %138, %61 : vector<16x64xf32>
    %cst_21 = arith.constant 0.000000e+00 : f32
    %140 = vector.broadcast %cst_21 : f32 to vector<16x64xf32>
    %141 = arith.maximumf %139, %140 : vector<16x64xf32>
    %142 = arith.mulf %31, %45 : vector<16x32xf32>
    %143 = arith.mulf %32, %48 : vector<16x32xf32>
    %144 = arith.addf %142, %143 : vector<16x32xf32>
    %145 = arith.mulf %33, %51 : vector<16x32xf32>
    %146 = arith.addf %144, %145 : vector<16x32xf32>
    %147 = arith.mulf %34, %54 : vector<16x32xf32>
    %148 = arith.addf %146, %147 : vector<16x32xf32>
    %149 = arith.mulf %35, %57 : vector<16x32xf32>
    %150 = arith.addf %148, %149 : vector<16x32xf32>
    %151 = arith.truncf %150 : vector<16x32xf32> to vector<16x32xbf16>
    %cst_22 = arith.constant dense<0.000000e+00> : vector<16x64xf32>
    %152 = tpu.matmul %151, %58, %cst_22 {dimension_numbers = #tpu.dot_dimension_numbers<[1], [0], [0], [1], [0, 0, 1, 1], [], []>} : vector<16x32xbf16>, vector<32x64xbf16>, vector<16x64xf32> -> vector<16x64xf32>
    %153 = arith.addf %152, %61 : vector<16x64xf32>
    %cst_23 = arith.constant 0.000000e+00 : f32
    %154 = vector.broadcast %cst_23 : f32 to vector<16x64xf32>
    %155 = arith.maximumf %153, %154 : vector<16x64xf32>
    %156 = arith.mulf %35, %45 : vector<16x32xf32>
    %157 = arith.mulf %36, %48 : vector<16x32xf32>
    %158 = arith.addf %156, %157 : vector<16x32xf32>
    %159 = arith.mulf %37, %51 : vector<16x32xf32>
    %160 = arith.addf %158, %159 : vector<16x32xf32>
    %161 = arith.mulf %38, %54 : vector<16x32xf32>
    %162 = arith.addf %160, %161 : vector<16x32xf32>
    %163 = arith.mulf %39, %57 : vector<16x32xf32>
    %164 = arith.addf %162, %163 : vector<16x32xf32>
    %165 = arith.truncf %164 : vector<16x32xf32> to vector<16x32xbf16>
    %cst_24 = arith.constant dense<0.000000e+00> : vector<16x64xf32>
    %166 = tpu.matmul %165, %58, %cst_24 {dimension_numbers = #tpu.dot_dimension_numbers<[1], [0], [0], [1], [0, 0, 1, 1], [], []>} : vector<16x32xbf16>, vector<32x64xbf16>, vector<16x64xf32> -> vector<16x64xf32>
    %167 = arith.addf %166, %61 : vector<16x64xf32>
    %cst_25 = arith.constant 0.000000e+00 : f32
    %168 = vector.broadcast %cst_25 : f32 to vector<16x64xf32>
    %169 = arith.maximumf %167, %168 : vector<16x64xf32>
    %170 = arith.mulf %39, %45 : vector<16x32xf32>
    %171 = arith.mulf %40, %48 : vector<16x32xf32>
    %172 = arith.addf %170, %171 : vector<16x32xf32>
    %173 = arith.mulf %41, %51 : vector<16x32xf32>
    %174 = arith.addf %172, %173 : vector<16x32xf32>
    %175 = arith.truncf %174 : vector<16x32xf32> to vector<16x32xbf16>
    %cst_26 = arith.constant dense<0.000000e+00> : vector<16x64xf32>
    %176 = tpu.matmul %175, %58, %cst_26 {dimension_numbers = #tpu.dot_dimension_numbers<[1], [0], [0], [1], [0, 0, 1, 1], [], []>} : vector<16x32xbf16>, vector<32x64xbf16>, vector<16x64xf32> -> vector<16x64xf32>
    %177 = arith.addf %176, %61 : vector<16x64xf32>
    %cst_27 = arith.constant 0.000000e+00 : f32
    %178 = vector.broadcast %cst_27 : f32 to vector<16x64xf32>
    %179 = arith.maximumf %177, %178 : vector<16x64xf32>
    %c48 = arith.constant 48 : index
    %c0_28 = arith.constant 0 : index
    %180 = vector.load %arg3[%c48, %c0_28] : memref<112x256xf32, #tpu.memory_space<vmem>>, vector<5x64xf32>
    %181 = vector.extract_strided_slice %180 {offsets = [0, 0], sizes = [1, 64], strides = [1, 1]} : vector<5x64xf32> to vector<1x64xf32>
    %182 = vector.shape_cast %181 : vector<1x64xf32> to vector<1x64xf32>
    %183 = vector.broadcast %182 : vector<1x64xf32> to vector<16x64xf32>
    %184 = vector.extract_strided_slice %180 {offsets = [1, 0], sizes = [1, 64], strides = [1, 1]} : vector<5x64xf32> to vector<1x64xf32>
    %185 = vector.shape_cast %184 : vector<1x64xf32> to vector<1x64xf32>
    %186 = vector.broadcast %185 : vector<1x64xf32> to vector<16x64xf32>
    %187 = vector.extract_strided_slice %180 {offsets = [2, 0], sizes = [1, 64], strides = [1, 1]} : vector<5x64xf32> to vector<1x64xf32>
    %188 = vector.shape_cast %187 : vector<1x64xf32> to vector<1x64xf32>
    %189 = vector.broadcast %188 : vector<1x64xf32> to vector<16x64xf32>
    %190 = vector.extract_strided_slice %180 {offsets = [3, 0], sizes = [1, 64], strides = [1, 1]} : vector<5x64xf32> to vector<1x64xf32>
    %191 = vector.shape_cast %190 : vector<1x64xf32> to vector<1x64xf32>
    %192 = vector.broadcast %191 : vector<1x64xf32> to vector<16x64xf32>
    %193 = vector.extract_strided_slice %180 {offsets = [4, 0], sizes = [1, 64], strides = [1, 1]} : vector<5x64xf32> to vector<1x64xf32>
    %194 = vector.shape_cast %193 : vector<1x64xf32> to vector<1x64xf32>
    %195 = vector.broadcast %194 : vector<1x64xf32> to vector<16x64xf32>
    %c32_29 = arith.constant 32 : index
    %c0_30 = arith.constant 0 : index
    %196 = vector.load %arg2[%c32_29, %c0_30] : memref<672x256xbf16, #tpu.memory_space<vmem>>, vector<64x128xbf16>
    %c56 = arith.constant 56 : index
    %c0_31 = arith.constant 0 : index
    %197 = vector.load %arg3[%c56, %c0_31] : memref<112x256xf32, #tpu.memory_space<vmem>>, vector<1x128xf32>
    %198 = vector.shape_cast %197 : vector<1x128xf32> to vector<1x128xf32>
    %199 = vector.broadcast %198 : vector<1x128xf32> to vector<16x128xf32>
    %200 = arith.mulf %71, %189 : vector<16x64xf32>
    %201 = arith.mulf %85, %192 : vector<16x64xf32>
    %202 = arith.addf %200, %201 : vector<16x64xf32>
    %203 = arith.mulf %99, %195 : vector<16x64xf32>
    %204 = arith.addf %202, %203 : vector<16x64xf32>
    %205 = arith.truncf %204 : vector<16x64xf32> to vector<16x64xbf16>
    %cst_32 = arith.constant dense<0.000000e+00> : vector<16x128xf32>
    %206 = tpu.matmul %205, %196, %cst_32 {dimension_numbers = #tpu.dot_dimension_numbers<[1], [0], [0], [1], [0, 0, 1, 1], [], []>} : vector<16x64xbf16>, vector<64x128xbf16>, vector<16x128xf32> -> vector<16x128xf32>
    %207 = arith.addf %206, %199 : vector<16x128xf32>
    %cst_33 = arith.constant 0.000000e+00 : f32
    %208 = vector.broadcast %cst_33 : f32 to vector<16x128xf32>
    %209 = arith.maximumf %207, %208 : vector<16x128xf32>
    %210 = arith.mulf %99, %183 : vector<16x64xf32>
    %211 = arith.mulf %113, %186 : vector<16x64xf32>
    %212 = arith.addf %210, %211 : vector<16x64xf32>
    %213 = arith.mulf %127, %189 : vector<16x64xf32>
    %214 = arith.addf %212, %213 : vector<16x64xf32>
    %215 = arith.mulf %141, %192 : vector<16x64xf32>
    %216 = arith.addf %214, %215 : vector<16x64xf32>
    %217 = arith.mulf %155, %195 : vector<16x64xf32>
    %218 = arith.addf %216, %217 : vector<16x64xf32>
    %219 = arith.truncf %218 : vector<16x64xf32> to vector<16x64xbf16>
    %cst_34 = arith.constant dense<0.000000e+00> : vector<16x128xf32>
    %220 = tpu.matmul %219, %196, %cst_34 {dimension_numbers = #tpu.dot_dimension_numbers<[1], [0], [0], [1], [0, 0, 1, 1], [], []>} : vector<16x64xbf16>, vector<64x128xbf16>, vector<16x128xf32> -> vector<16x128xf32>
    %221 = arith.addf %220, %199 : vector<16x128xf32>
    %cst_35 = arith.constant 0.000000e+00 : f32
    %222 = vector.broadcast %cst_35 : f32 to vector<16x128xf32>
    %223 = arith.maximumf %221, %222 : vector<16x128xf32>
    %224 = arith.mulf %155, %183 : vector<16x64xf32>
    %225 = arith.mulf %169, %186 : vector<16x64xf32>
    %226 = arith.addf %224, %225 : vector<16x64xf32>
    %227 = arith.mulf %179, %189 : vector<16x64xf32>
    %228 = arith.addf %226, %227 : vector<16x64xf32>
    %229 = arith.truncf %228 : vector<16x64xf32> to vector<16x64xbf16>
    %cst_36 = arith.constant dense<0.000000e+00> : vector<16x128xf32>
    %230 = tpu.matmul %229, %196, %cst_36 {dimension_numbers = #tpu.dot_dimension_numbers<[1], [0], [0], [1], [0, 0, 1, 1], [], []>} : vector<16x64xbf16>, vector<64x128xbf16>, vector<16x128xf32> -> vector<16x128xf32>
    %231 = arith.addf %230, %199 : vector<16x128xf32>
    %cst_37 = arith.constant 0.000000e+00 : f32
    %232 = vector.broadcast %cst_37 : f32 to vector<16x128xf32>
    %233 = arith.maximumf %231, %232 : vector<16x128xf32>
    %c64 = arith.constant 64 : index
    %c0_38 = arith.constant 0 : index
    %234 = vector.load %arg3[%c64, %c0_38] : memref<112x256xf32, #tpu.memory_space<vmem>>, vector<5x128xf32>
    %235 = vector.extract_strided_slice %234 {offsets = [2, 0], sizes = [1, 128], strides = [1, 1]} : vector<5x128xf32> to vector<1x128xf32>
    %236 = vector.shape_cast %235 : vector<1x128xf32> to vector<1x128xf32>
    %237 = vector.broadcast %236 : vector<1x128xf32> to vector<16x128xf32>
    %238 = vector.extract_strided_slice %234 {offsets = [3, 0], sizes = [1, 128], strides = [1, 1]} : vector<5x128xf32> to vector<1x128xf32>
    %239 = vector.shape_cast %238 : vector<1x128xf32> to vector<1x128xf32>
    %240 = vector.broadcast %239 : vector<1x128xf32> to vector<16x128xf32>
    %241 = vector.extract_strided_slice %234 {offsets = [4, 0], sizes = [1, 128], strides = [1, 1]} : vector<5x128xf32> to vector<1x128xf32>
    %242 = vector.shape_cast %241 : vector<1x128xf32> to vector<1x128xf32>
    %243 = vector.broadcast %242 : vector<1x128xf32> to vector<16x128xf32>
    %c96 = arith.constant 96 : index
    %c0_39 = arith.constant 0 : index
    %244 = vector.load %arg2[%c96, %c0_39] : memref<672x256xbf16, #tpu.memory_space<vmem>>, vector<128x256xbf16>
    %c72 = arith.constant 72 : index
    %c0_40 = arith.constant 0 : index
    %245 = vector.load %arg3[%c72, %c0_40] : memref<112x256xf32, #tpu.memory_space<vmem>>, vector<1x256xf32>
    %246 = vector.shape_cast %245 : vector<1x256xf32> to vector<1x256xf32>
    %247 = vector.broadcast %246 : vector<1x256xf32> to vector<16x256xf32>
    %248 = arith.mulf %209, %237 : vector<16x128xf32>
    %249 = arith.mulf %223, %240 : vector<16x128xf32>
    %250 = arith.addf %248, %249 : vector<16x128xf32>
    %251 = arith.mulf %233, %243 : vector<16x128xf32>
    %252 = arith.addf %250, %251 : vector<16x128xf32>
    %253 = arith.truncf %252 : vector<16x128xf32> to vector<16x128xbf16>
    %cst_41 = arith.constant dense<0.000000e+00> : vector<16x256xf32>
    %254 = tpu.matmul %253, %244, %cst_41 {dimension_numbers = #tpu.dot_dimension_numbers<[1], [0], [0], [1], [0, 0, 1, 1], [], []>} : vector<16x128xbf16>, vector<128x256xbf16>, vector<16x256xf32> -> vector<16x256xf32>
    %255 = arith.addf %254, %247 : vector<16x256xf32>
    %cst_42 = arith.constant 0.000000e+00 : f32
    %256 = vector.broadcast %cst_42 : f32 to vector<16x256xf32>
    %257 = arith.maximumf %255, %256 : vector<16x256xf32>
    %c224 = arith.constant 224 : index
    %c0_43 = arith.constant 0 : index
    %258 = vector.load %arg2[%c224, %c0_43] : memref<672x256xbf16, #tpu.memory_space<vmem>>, vector<256x64xbf16>
    %c80 = arith.constant 80 : index
    %c0_44 = arith.constant 0 : index
    %259 = vector.load %arg3[%c80, %c0_44] : memref<112x256xf32, #tpu.memory_space<vmem>>, vector<1x64xf32>
    %260 = arith.truncf %257 : vector<16x256xf32> to vector<16x256xbf16>
    %cst_45 = arith.constant dense<0.000000e+00> : vector<16x64xf32>
    %261 = tpu.matmul %260, %258, %cst_45 {dimension_numbers = #tpu.dot_dimension_numbers<[1], [0], [0], [1], [0, 0, 1, 1], [], []>} : vector<16x256xbf16>, vector<256x64xbf16>, vector<16x64xf32> -> vector<16x64xf32>
    %262 = vector.broadcast %259 : vector<1x64xf32> to vector<16x64xf32>
    %263 = arith.addf %261, %262 : vector<16x64xf32>
    %cst_46 = arith.constant 0.000000e+00 : f32
    %264 = vector.broadcast %cst_46 : f32 to vector<16x64xf32>
    %265 = arith.maximumf %263, %264 : vector<16x64xf32>
    %c480 = arith.constant 480 : index
    %c0_47 = arith.constant 0 : index
    %266 = vector.load %arg2[%c480, %c0_47] : memref<672x256xbf16, #tpu.memory_space<vmem>>, vector<64x64xbf16>
    %c88 = arith.constant 88 : index
    %c0_48 = arith.constant 0 : index
    %267 = vector.load %arg3[%c88, %c0_48] : memref<112x256xf32, #tpu.memory_space<vmem>>, vector<1x64xf32>
    %268 = arith.truncf %265 : vector<16x64xf32> to vector<16x64xbf16>
    %cst_49 = arith.constant dense<0.000000e+00> : vector<16x64xf32>
    %269 = tpu.matmul %268, %266, %cst_49 {dimension_numbers = #tpu.dot_dimension_numbers<[1], [0], [0], [1], [0, 0, 1, 1], [], []>} : vector<16x64xbf16>, vector<64x64xbf16>, vector<16x64xf32> -> vector<16x64xf32>
    %270 = vector.broadcast %267 : vector<1x64xf32> to vector<16x64xf32>
    %271 = arith.addf %269, %270 : vector<16x64xf32>
    %cst_50 = arith.constant 0.000000e+00 : f32
    %272 = vector.broadcast %cst_50 : f32 to vector<16x64xf32>
    %273 = arith.maximumf %271, %272 : vector<16x64xf32>
    %c544 = arith.constant 544 : index
    %c0_51 = arith.constant 0 : index
    %274 = vector.load %arg2[%c544, %c0_51] : memref<672x256xbf16, #tpu.memory_space<vmem>>, vector<64x64xbf16>
    %c96_52 = arith.constant 96 : index
    %c0_53 = arith.constant 0 : index
    %275 = vector.load %arg3[%c96_52, %c0_53] : memref<112x256xf32, #tpu.memory_space<vmem>>, vector<1x64xf32>
    %276 = arith.truncf %273 : vector<16x64xf32> to vector<16x64xbf16>
    %cst_54 = arith.constant dense<0.000000e+00> : vector<16x64xf32>
    %277 = tpu.matmul %276, %274, %cst_54 {dimension_numbers = #tpu.dot_dimension_numbers<[1], [0], [0], [1], [0, 0, 1, 1], [], []>} : vector<16x64xbf16>, vector<64x64xbf16>, vector<16x64xf32> -> vector<16x64xf32>
    %278 = vector.broadcast %275 : vector<1x64xf32> to vector<16x64xf32>
    %279 = arith.addf %277, %278 : vector<16x64xf32>
    %cst_55 = arith.constant 0.000000e+00 : f32
    %280 = vector.broadcast %cst_55 : f32 to vector<16x64xf32>
    %281 = arith.maximumf %279, %280 : vector<16x64xf32>
    %c608 = arith.constant 608 : index
    %c0_56 = arith.constant 0 : index
    %282 = vector.load %arg2[%c608, %c0_56] : memref<672x256xbf16, #tpu.memory_space<vmem>>, vector<64x128xbf16>
    %c104 = arith.constant 104 : index
    %c0_57 = arith.constant 0 : index
    %283 = vector.load %arg3[%c104, %c0_57] : memref<112x256xf32, #tpu.memory_space<vmem>>, vector<1x128xf32>
    %284 = arith.truncf %281 : vector<16x64xf32> to vector<16x64xbf16>
    %cst_58 = arith.constant dense<0.000000e+00> : vector<16x128xf32>
    %285 = tpu.matmul %284, %282, %cst_58 {dimension_numbers = #tpu.dot_dimension_numbers<[1], [0], [0], [1], [0, 0, 1, 1], [], []>} : vector<16x64xbf16>, vector<64x128xbf16>, vector<16x128xf32> -> vector<16x128xf32>
    %286 = vector.broadcast %283 : vector<1x128xf32> to vector<16x128xf32>
    %287 = arith.addf %285, %286 : vector<16x128xf32>
    %c0_59 = arith.constant 0 : index
    %c0_60 = arith.constant 0 : index
    %288 = vector.load %arg4[%c0_59, %c0_60] : memref<16x128xf32, #tpu.memory_space<vmem>>, vector<16x128xf32>
    tpu.vector_store %arg4[%c0_59, %c0_60], %287 {strides = array<i32>} : memref<16x128xf32, #tpu.memory_space<vmem>>, vector<16x128xf32>,
    return
  }
  func.func @transform_0(%arg0: i32) -> (i32, i32, i32) {
    %c0_i32 = arith.constant 0 : i32
    %c0_i32_0 = arith.constant 0 : i32
    %c0_i32_1 = arith.constant 0 : i32
    return %arg0, %c0_i32, %c0_i32_0 : i32, i32, i32
  }
  func.func @transform_1(%arg0: i32) -> (i32, i32) {
    %c0_i32 = arith.constant 0 : i32
    %c0_i32_0 = arith.constant 0 : i32
    %c0_i32_1 = arith.constant 0 : i32
    return %c0_i32, %c0_i32_0 : i32, i32
  }
  func.func @transform_2(%arg0: i32) -> (i32, i32) {
    %c0_i32 = arith.constant 0 : i32
    %c0_i32_0 = arith.constant 0 : i32
    %c0_i32_1 = arith.constant 0 : i32
    return %c0_i32, %c0_i32_0 : i32, i32
  }
  func.func @transform_3(%arg0: i32) -> (i32, i32) {
    %c0_i32 = arith.constant 0 : i32
    %c0_i32_0 = arith.constant 0 : i32
    return %arg0, %c0_i32 : i32, i32
  }
}

</mosaic_0001>

<bundles_post_ra>
// kernel: tpu_custom_call.1
= control target key start
LH: loop header
LB: loop body
LE: loop exit
PB: predicated region body
PF: predicated region fallthrough
CT: control target
= control target key end

     0   :  { %8 = vsyncpa [#allocation3], 0  ;;  %s3951_s0 = inlined_call_operand.vmem [shape: f32[2,528,20], index: 0, kind: input, shape index: {}]   ;;  %s3952_s1 = inlined_call_operand.vmem [shape: bf16[672,256], index: 1, kind: input, shape index: {}]   ;;  %s3953_s2 = inlined_call_operand.vmem [shape: f32[112,256], index: 2, kind: input, shape index: {}]   ;;  %s3954_s3 = inlined_call_operand.hbm [shape: f32[32,128], index: 3, kind: output, shape index: {}]  }
   0x1   :  { %10 = vsyncpa [#allocation3 + $0x1], 0  ;;  %s3156_s12 = smov 0   ;;  %s3158_s13 = smov 0  }
   0x2   :  { %s3160_s14 = smov 0   ;;  %s3162_s15 = smov 0  }
   0x3 LB: > { %s3177_s16 = sadd.s32 4294967295, %s3128_s15   ;;  %s2417_s17 = sadd.s32 4294967294, %s3128_s15   ;;  %s3128_s15 = sphi %s3162_s15, %s3960_s15   ;;  %s3124_s14 = sphi %s3160_s14, %s3959_s14   ;;  %s3120_s13 = sphi %s3158_s13, %s3958_s13   ;;  %s3116_s12 = sphi %s3156_s12, %s3957_s12  }
   0x4   : > { %s3181_s18 = sadd.s32 1, %s3128_s15   ;;  %s91_s19 = sadd.s32 1, %s3124_s14 }
   0x5   : > { %s88_s20 = ssub.s32 %s3128_s15, %s3181_s18  ;;  %p101_p0 = scmp.ne.s32.totalorder %s3124_s14, %s3120_s13 }
   0x6   : > { %p89_p1 = scmp.eq.s32.totalorder %s88_s20, 0  ;;  %p102_p2 = scmp.eq.s32.totalorder %s3177_s16, 1 }
   0x7   : > { %p107_p3 = scmp.ne.s32.totalorder %s3120_s13, %s3116_s12  ;;  %p108_p4 = scmp.eq.s32.totalorder %s2417_s17, 1 }
   0x8   : > { %s3192_s21 = scalar_select %p89_p1, %s3124_s14, %s91_s19  }
   0x9   : > { %p3194_p5 = por %p102_p2, %p101_p0  ;;  %p3198_p6 = por %p108_p4, %p107_p3 }
   0xa   : > { %p2420_p7 = scmp.ge.s32.totalorder %s3128_s15, 1  ;;  %p140_p8 = scmp.lt.s32.totalorder %s3128_s15, 3 }
   0xc   : > { %p141_p9 = pnand %p2420_p7, %p140_p8 }
   0xd   : > { %v237_v0 = vld [vmem:[%s3953_s2] sm:$0xff] (!%p141_p9)  ;;  %v238_v1 = vld [vmem:[%s3953_s2 + $0x10] sm:$0xff] (!%p141_p9)  ;;  %vm440_vm0 = vcmask (!%p141_p9), 1043456   ;;  %p164_p10 = scmp.lt.s32.totalorder (!%p141_p9), %s3177_s16, 1  ;;  %vm241_vm1 = vcmask (!%p141_p9), 162816   ;;  %v3130_v56 = vmov (!%p141_p9), 0.0  }
   0xe   : > { %144 = sbr.rel (%p141_p9) target bundleno = 1943 (0x797), region = 32  ;;  %v239_v2 = vld [vmem:[%s3953_s2 + $0x20] sm:$0xf] (!%p141_p9)  ;;  %v2959_v3 = vpack.c.bf16 (!%p141_p9), %v238_v1, %v237_v0  ;;  %2815 = vmatprep.subr.bf16.mxu1 (!%p141_p9), %v3130_v56  ;;  %v3335_v59 = vld [vmem:[%s3952_s1 + $0x10] ss:$8 sps:$4 sm:$0xff] (!%p141_p9)   ;;  %vm3131_vm2 = vmmov (!%p141_p9), 0  }
   0xf   : > { %v3323_v55 = vld [vmem:[%s3952_s1] ss:$8 sps:$4 sm:$0xff] (!%p141_p9)   ;;  %2819 = vmatprep.mubr.msk.bf16.mxu1 (!%p141_p9), %vm3131_vm2, %v3130_v56  ;;  %vm954_vm3 = vcmask (!%p141_p9), 261120   ;;  %vm1578_vm4 = vcmask (!%p141_p9), 523264   ;;  %s161_s29 = sand.u32 (!%p141_p9), 1, %s3120_s13   ;;  %s2561_s8 = sshll.u32 (!%p141_p9), %s3177_s16, 8 }
  0x10   : > { %2960 = vmatprep.subr.bf16.mxu0 (!%p141_p9), %v2959_v3  ;;  %2816 = vmatpush3.bf16.msra.mxu1 (!%p141_p9), %v3323_v55  ;;  %s3908_s11 = scalar_lea.hbm (!%p141_p9), %s3954_s3, %s2561_s8  ;;  %s3910_s17 = scalar_lea.sflag (!%p141_p9), [#allocation3], %s161_s29 }
  0x11   : > { %2962 = vmatpush3.bf16.msra.mxu0 (!%p141_p9), %v2959_v3  ;;  %2817 = vmatprep.subr.bf16.mxu1 (!%p141_p9), %v3130_v56  ;;  %s3133_s19 = smov (!%p141_p9), [#allocation2]  }
  0x12   : > { %2714 = vmatprep.subr.msk.mxu0 (!%p141_p9), %vm440_vm0, %v239_v2  ;;  %s3070_s20 = sshll.u32 (!%p141_p9), %s3133_s19, 4  ;;  %s3071_s20 = int_to_ptr.vmem [resolvable:$false] %s3070_s20 }
  0x13   : > { %s3072_s24 = scalar_lea.vmem (!%p141_p9), %s3071_s20, 512 }
  0x14   : > { %2818 = vmatpush3.bf16.msra.mxu1 (!%p141_p9), %v3335_v59 }
  0x15   : > { %s165_s30 = scalar_select %p164_p10, %s3177_s16, 1  ;;  %2715 = vmatpush3.msk.msra.mxu0 %vm440_vm0, %v239_v2  ;;  %2823 = vmatprep.subr.bf16.mxu1 %v3130_v56 }
  0x17   : > { %s2963_s4 = smul.u32 528, %s165_s30  ;;  %s2421_s30 = sshll.u32 %s161_s29, 4 }
  0x18   : > { %s163_s6 = scalar_lea.vmem [#allocation2], %s2421_s30 }
  0x19   : > { %s3218_s7 = scalar_lea.vmem %s3951_s0, %s2963_s4 }
  0x1a   : > { %v171_v4 = vld [vmem:[%s3218_s7] sm:$0xff]  ;;  %v172_v5 = vld [vmem:[%s3218_s7 + $0x8] sm:$0xff]  ;;  %v173_v6 = vld [vmem:[%s3218_s7 + $0x10] sm:$0xff] }
  0x1b   : > { %2716 = vmatprep.mubr.msk.f32.mxu0 %vm241_vm1, %v171_v4  ;;  %v174_v7 = vld [vmem:[%s3218_s7 + $0x18] sm:$0xff]  ;;  %v175_v8 = vld [vmem:[%s3218_s7 + $0x20] sm:$0xff]  ;;  %v176_v9 = vld [vmem:[%s3218_s7 + $0x28] sm:$0xff] }
  0x1c   : > { %2717 = vmatmul.mubr.msk.f32.vlgmr.msra.gmra.mrb[0].mxu0 %vm241_vm1, %v172_v5  ;;  %v177_v10 = vld [vmem:[%s3218_s7 + $0x30] sm:$0xff]  ;;  %v178_v11 = vld [vmem:[%s3218_s7 + $0x38] sm:$0xff]  ;;  %v179_v12 = vld [vmem:[%s3218_s7 + $0x40] sm:$0xff] }
  0x1d   : > { %2719 = vmatprep.mubr.msk.f32.mxu0 %vm241_vm1, %v173_v6  ;;  %v180_v13 = vld [vmem:[%s3218_s7 + $0x48] sm:$0xff]  ;;  %v181_v14 = vld [vmem:[%s3218_s7 + $0x50] sm:$0xff]  ;;  %v182_v15 = vld [vmem:[%s3218_s7 + $0x58] sm:$0xff] }
  0x1e   : > { %v183_v16 = vld [vmem:[%s3218_s7 + $0x60] sm:$0xff]  ;;  %v184_v17 = vld [vmem:[%s3218_s7 + $0x68] sm:$0xff]  ;;  %v185_v18 = vld [vmem:[%s3218_s7 + $0x70] sm:$0xff] }
  0x1f   : > { %v186_v19 = vld [vmem:[%s3218_s7 + $0x78] sm:$0xff]  ;;  %v187_v20 = vld [vmem:[%s3218_s7 + $0x80] sm:$0xff]  ;;  %v188_v21 = vld [vmem:[%s3218_s7 + $0x88] sm:$0xff] }
  0x20   : > { %2720 = vmatmul.mubr.msk.f32.gmra.mrb[2].mxu0 %vm241_vm1, %v174_v7  ;;  %v189_v22 = vld [vmem:[%s3218_s7 + $0x90] sm:$0xff]  ;;  %v190_v23 = vld [vmem:[%s3218_s7 + $0x98] sm:$0xff]  ;;  %v191_v24 = vld [vmem:[%s3218_s7 + $0xa0] sm:$0xff] }
  0x21   : > { %2722 = vmatprep.mubr.msk.f32.mxu0 %vm241_vm1, %v175_v8  ;;  %v192_v25 = vld [vmem:[%s3218_s7 + $0xa8] sm:$0xff]  ;;  %v193_v26 = vld [vmem:[%s3218_s7 + $0xb0] sm:$0xff]  ;;  %v194_v27 = vld [vmem:[%s3218_s7 + $0xb8] sm:$0xff] }
  0x22   : > { %v195_v28 = vld [vmem:[%s3218_s7 + $0xc0] sm:$0xff]  ;;  %v196_v29 = vld [vmem:[%s3218_s7 + $0xc8] sm:$0xff]  ;;  %v197_v30 = vld [vmem:[%s3218_s7 + $0xd0] sm:$0xff] }
  0x23   : > { %v198_v31 = vld [vmem:[%s3218_s7 + $0xd8] sm:$0xff]  ;;  %v199_v32 = vld [vmem:[%s3218_s7 + $0xe0] sm:$0xff]  ;;  %v200_v33 = vld [vmem:[%s3218_s7 + $0xe8] sm:$0xff] }
  0x24   : > { %2723 = vmatmul.mubr.msk.f32.gmra.mrb[4].mxu0 %vm241_vm1, %v176_v9  ;;  %v201_v34 = vld [vmem:[%s3218_s7 + $0xf0] sm:$0xff]  ;;  %v202_v35 = vld [vmem:[%s3218_s7 + $0xf8] sm:$0xff]  ;;  %v203_v36 = vld [vmem:[%s3218_s7 + $0x100] sm:$0xff]  ;;  %v906_v9 = vlaneseq }
  0x25   : > { %2725 = vmatprep.mubr.msk.f32.mxu0 %vm241_vm1, %v177_v10  ;;  %v204_v37 = vld [vmem:[%s3218_s7 + $0x108] sm:$0xff]  ;;  %v205_v38 = vld [vmem:[%s3218_s7 + $0x110] sm:$0xff]  ;;  %v206_v39 = vld [vmem:[%s3218_s7 + $0x118] sm:$0xff] }
  0x26   : > { %v207_v40 = vld [vmem:[%s3218_s7 + $0x120] sm:$0xff]  ;;  %v208_v41 = vld [vmem:[%s3218_s7 + $0x128] sm:$0xff]  ;;  %v209_v42 = vld [vmem:[%s3218_s7 + $0x130] sm:$0xff]  ;;  %v907_v10 = vshrl.u32 %v906_v9, 7 }
  0x27   : > { %v210_v43 = vld [vmem:[%s3218_s7 + $0x138] sm:$0xff]  ;;  %v211_v44 = vld [vmem:[%s3218_s7 + $0x140] sm:$0xff]  ;;  %v212_v45 = vld [vmem:[%s3218_s7 + $0x148] sm:$0xff] }
  0x28   : > { %2726 = vmatmul.mubr.msk.f32.gmra.mrb[6].mxu0 %vm241_vm1, %v178_v11  ;;  %v213_v46 = vld [vmem:[%s3218_s7 + $0x150] sm:$0xff]  ;;  %v214_v47 = vld [vmem:[%s3218_s7 + $0x158] sm:$0xff]  ;;  %v215_v48 = vld [vmem:[%s3218_s7 + $0x160] sm:$0xff] }
  0x29   : > { %2728 = vmatprep.mubr.msk.f32.mxu0 %vm241_vm1, %v179_v12  ;;  %v216_v49 = vld [vmem:[%s3218_s7 + $0x168] sm:$0xff]  ;;  %v217_v50 = vld [vmem:[%s3218_s7 + $0x170] sm:$0xff]  ;;  %v218_v51 = vld [vmem:[%s3218_s7 + $0x178] sm:$0xff] }
  0x2a   : > { %v219_v52 = vld [vmem:[%s3218_s7 + $0x180] sm:$0xff]  ;;  %v220_v53 = vld [vmem:[%s3218_s7 + $0x188] sm:$0xff]  ;;  %v221_v54 = vld [vmem:[%s3218_s7 + $0x190] sm:$0xff] }
  0x2b   : > { %v222_v57 = vld [vmem:[%s3218_s7 + $0x198] sm:$0xff]  ;;  %v223_v58 = vld [vmem:[%s3218_s7 + $0x1a0] sm:$0xff]  ;;  %v224_v60 = vld [vmem:[%s3218_s7 + $0x1a8] sm:$0xff] }
  0x2c   : > { %2729 = vmatmul.mubr.msk.f32.gmra.mrb[8].mxu0 %vm241_vm1, %v180_v13  ;;  %v225_v61 = vld [vmem:[%s3218_s7 + $0x1b0] sm:$0xff]  ;;  %v226_v62 = vld [vmem:[%s3218_s7 + $0x1b8] sm:$0xff]  ;;  %v227_v63 = vld [vmem:[%s3218_s7 + $0x1c0] sm:$0xff] }
  0x2d   : > { %2731 = vmatprep.mubr.msk.f32.mxu0 %vm241_vm1, %v181_v14  ;;  %v228_v0 = vld [vmem:[%s3218_s7 + $0x1c8] sm:$0xff]  ;;  %v229_v1 = vld [vmem:[%s3218_s7 + $0x1d0] sm:$0xff]  ;;  %v230_v2 = vld [vmem:[%s3218_s7 + $0x1d8] sm:$0xff]  ;;  %v3375_v14 = vsub.s32 2, %v907_v10 }
  0x2e   : > { %v231_v3 = vld [vmem:[%s3218_s7 + $0x1e0] sm:$0xff]  ;;  %v232_v4 = vld [vmem:[%s3218_s7 + $0x1e8] sm:$0xff]  ;;  %v233_v5 = vld [vmem:[%s3218_s7 + $0x1f0] sm:$0xff] }
  0x2f   : > { %v234_v6 = vld [vmem:[%s3218_s7 + $0x1f8] sm:$0xff]  ;;  %v235_v7 = vld [vmem:[%s3218_s7 + $0x200] sm:$0xff]  ;;  %v236_v8 = vld [vmem:[%s3218_s7 + $0x208] sm:$0xff]  ;;  %s2355_s7 = sshll.u32 %s163_s6, 4  ;;  %s3903_s7 = int_to_ptr.vmem [resolvable:$true] %s2355_s7 }
  0x30   : > { %2732 = vmatmul.mubr.msk.f32.gmra.mrb[10].mxu0 %vm241_vm1, %v182_v15  ;;  %v3372_v11 = vld [vmem:[%s3953_s2 + $0x30] ss:$0 sm:$0xff]  ;;  %s3066_s16 = scalar_lea.vmem %s3903_s7, 256  ;;  %p3073_p0 = scmp.lt.s32.totalorder %s3903_s7, %s3071_s20 }
  0x31   : > { %2734 = vmatprep.mubr.msk.f32.mxu0 %vm241_vm1, %v183_v16  ;;  %v3377_v16 = vsub.s32 3, %v907_v10  ;;  %p3067_p11 = scmp.ne.s32.totalorder %s3903_s7, %s3066_s16  ;;  %p3074_p1 = scmp.lt.s32.totalorder %s3072_s24, %s3066_s16 }
  0x33   : > { %p3068_p12 = pnand %p3067_p11, %p3194_p5  ;;  %p3075_p2 = por %p3074_p1, %p3073_p0 }
  0x34   : > { %2735 = vmatmul.mubr.msk.f32.gmra.mrb[12].mxu0 %vm241_vm1, %v184_v17  ;;  %v905_v17 = vld [vmem:[%s3953_s2 + $0x40] sm:$0x1f] }
  0x35   : > { %2737 = vmatprep.mubr.msk.f32.mxu0 %vm241_vm1, %v185_v18  ;;  %p3069_p13 = pneg %p3068_p12 }
  0x37   : > { %p3076_p3 = pnand %p3075_p2, %p3069_p13 }
  0x38   : > { %2738 = vmatmul.mubr.msk.f32.gmra.mrb[14].mxu0 %vm241_vm1, %v186_v19 }
  0x39   : > { %2740 = vmatprep.mubr.msk.f32.mxu0 %vm241_vm1, %v187_v20  ;;  %v3383_v20 = vsub.s32 4, %v907_v10 }
  0x3c   : > { %2741 = vmatmul.mubr.msk.f32.gmra.mrb[16].mxu0 %vm241_vm1, %v188_v21 }
  0x3d   : > { %2743 = vmatprep.mubr.msk.f32.mxu0 %vm241_vm1, %v189_v22  ;;  %v3386_v22 = vrot.slane %v905_v17, %v3375_v14 }
  0x40   : > { %2744 = vmatmul.mubr.msk.f32.gmra.mrb[18].mxu0 %vm241_vm1, %v190_v23 }
  0x41   : > { %2746 = vmatprep.mubr.msk.f32.mxu0 %vm241_vm1, %v191_v24  ;;  %v3390_v24 = vrot.slane %v905_v17, %v3377_v16 }
  0x44   : > { %2747 = vmatmul.mubr.msk.f32.gmra.mrb[20].mxu0 %vm241_vm1, %v192_v25 }
  0x45   : > { %2749 = vmatprep.mubr.msk.f32.mxu0 %vm241_vm1, %v193_v26 }
  0x48   : > { %2750 = vmatmul.mubr.msk.f32.gmra.mrb[22].mxu0 %vm241_vm1, %v194_v27 }
  0x49   : > { %2752 = vmatprep.mubr.msk.f32.mxu0 %vm241_vm1, %v195_v28 }
  0x4c   : > { %2753 = vmatmul.mubr.msk.f32.gmra.mrb[24].mxu0 %vm241_vm1, %v196_v29 }
  0x4d   : > { %2755 = vmatprep.mubr.msk.f32.mxu0 %vm241_vm1, %v197_v30 }
  0x50   : > { %2756 = vmatmul.mubr.msk.f32.gmra.mrb[26].mxu0 %vm241_vm1, %v198_v31  ;;  %v3393_v31 = vsub.s32 0, %v907_v10 }
  0x51   : > { %2758 = vmatprep.mubr.msk.f32.mxu0 %vm241_vm1, %v199_v32  ;;  %v3396_v32 = vrot.slane %v905_v17, %v3383_v20 }
  0x54   : > { %2759 = vmatmul.mubr.msk.f32.gmra.mrb[28].mxu0 %vm241_vm1, %v200_v33 }
  0x55   : > { %2761 = vmatprep.mubr.msk.f32.mxu0 %vm241_vm1, %v201_v34 }
  0x58   : > { %2762 = vmatmul.mubr.msk.f32.gmra.mrb[30].mxu0 %vm241_vm1, %v202_v35 }
  0x59   : > { %2764 = vmatprep.mubr.msk.f32.mxu0 %vm241_vm1, %v203_v36 }
  0x5c   : > { %2765 = vmatmul.mubr.msk.f32.gmra.mrb[32].mxu0 %vm241_vm1, %v204_v37  ;;  %v3401_v37 = vsub.s32 1, %v907_v10 }
  0x5d   : > { %2767 = vmatprep.mubr.msk.f32.mxu0 %vm241_vm1, %v205_v38 }
  0x60   : > { %2768 = vmatmul.mubr.msk.f32.gmra.mrb[34].mxu0 %vm241_vm1, %v206_v39 }
  0x61   : > { %2770 = vmatprep.mubr.msk.f32.mxu0 %vm241_vm1, %v207_v40 }
  0x64   : > { %2771 = vmatmul.mubr.msk.f32.gmra.mrb[36].mxu0 %vm241_vm1, %v208_v41 }
  0x65   : > { %2773 = vmatprep.mubr.msk.f32.mxu0 %vm241_vm1, %v209_v42 }
  0x68   : > { %2774 = vmatmul.mubr.msk.f32.gmra.mrb[38].mxu0 %vm241_vm1, %v210_v43 }
  0x69   : > { %2776 = vmatprep.mubr.msk.f32.mxu0 %vm241_vm1, %v211_v44 }
  0x6c   : > { %2777 = vmatmul.mubr.msk.f32.gmra.mrb[40].mxu0 %vm241_vm1, %v212_v45 }
  0x6d   : > { %2779 = vmatprep.mubr.msk.f32.mxu0 %vm241_vm1, %v213_v46  ;;  %v3407_v46 = vrot.slane %v905_v17, %v3393_v31 }
  0x70   : > { %2780 = vmatmul.mubr.msk.f32.gmra.mrb[42].mxu0 %vm241_vm1, %v214_v47 }
  0x71   : > { %2782 = vmatprep.mubr.msk.f32.mxu0 %vm241_vm1, %v215_v48 }
  0x74   : > { %2783 = vmatmul.mubr.msk.f32.gmra.mrb[44].mxu0 %vm241_vm1, %v216_v49  ;;  %v3412_v49 = vrot.slane %v905_v17, %v3401_v37 }
  0x75   : > { %2785 = vmatprep.mubr.msk.f32.mxu0 %vm241_vm1, %v217_v50 }
  0x78   : > { %2786 = vmatmul.mubr.msk.f32.gmra.mrb[46].mxu0 %vm241_vm1, %v218_v51 }
  0x79   : > { %2788 = vmatprep.mubr.msk.f32.mxu0 %vm241_vm1, %v219_v52 }
  0x7c   : > { %2789 = vmatmul.mubr.msk.f32.gmra.mrb[48].mxu0 %vm241_vm1, %v220_v53 }
  0x7d   : > { %2791 = vmatprep.mubr.msk.f32.mxu0 %vm241_vm1, %v221_v54 }
  0x80   : > { %2792 = vmatmul.mubr.msk.f32.gmra.mrb[50].mxu0 %vm241_vm1, %v222_v57 }
  0x81   : > { %2794 = vmatprep.mubr.msk.f32.mxu0 %vm241_vm1, %v223_v58 }
  0x84   : > { %2795 = vmatmul.mubr.msk.f32.gmra.mrb[52].mxu0 %vm241_vm1, %v224_v60 }
  0x85   : > { %2797 = vmatprep.mubr.msk.f32.mxu0 %vm241_vm1, %v225_v61 }
  0x88   : > { %2798 = vmatmul.mubr.msk.f32.gmra.mrb[54].mxu0 %vm241_vm1, %v226_v62 }
  0x89   : > { %2800 = vmatprep.mubr.msk.f32.mxu0 %vm241_vm1, %v227_v63 }
  0x8c   : > { %2801 = vmatmul.mubr.msk.f32.gmra.mrb[56].mxu0 %vm241_vm1, %v228_v0 }
  0x8d   : > { %2803 = vmatprep.mubr.msk.f32.mxu0 %vm241_vm1, %v229_v1 }
  0x90   : > { %2804 = vmatmul.mubr.msk.f32.gmra.mrb[58].mxu0 %vm241_vm1, %v230_v2 }
  0x91   : > { %2806 = vmatprep.mubr.msk.f32.mxu0 %vm241_vm1, %v231_v3 }
  0x94   : > { %2807 = vmatmul.mubr.msk.f32.gmra.mrb[60].mxu0 %vm241_vm1, %v232_v4 }
  0x95   : > { %2809 = vmatprep.mubr.msk.f32.mxu0 %vm241_vm1, %v233_v5 }
  0x98   : > { %2810 = vmatmul.mubr.msk.f32.gmra.mrb[62].mxu0 %vm241_vm1, %v234_v6 }
  0x99   : > { %2812 = vmatprep.mubr.msk.f32.mxu0 %vm241_vm1, %v235_v7 }
  0x9c   : > { %2813 = vmatmul.mubr.msk.f32.gmra.mrb[64].mxu0 %vm241_vm1, %v236_v8 }
  0xef   : > { %v2718_v12 = vpop.f32.mrb[0].mxu0 }
  0xf0   : > { %v516_v13 = vadd.f32 %v2718_v12, %v3372_v11  ;;  %v510_v15 = vpop.f32.mrb[1].mxu0 }
  0xf1   : > { %v511_v18 = vadd.f32 %v510_v15, %v3372_v11 }
  0xf2   : > { %v840_v21 = vmax.f32 %v516_v13, 0.0 }
  0xf3   : > { %v2721_v19 = vpop.f32.mrb[2].mxu0  ;;  %v839_v26 = vmax.f32 %v511_v18, 0.0 }
  0xf4   : > { %v526_v23 = vadd.f32 %v2721_v19, %v3372_v11  ;;  %v520_v25 = vpop.f32.mrb[3].mxu0  ;;  %v932_v33 = vmul.f32 %v3386_v22, %v840_v21 }
  0xf5   : > { %v521_v27 = vadd.f32 %v520_v25, %v3372_v11  ;;  %v931_v38 = vmul.f32 %v3386_v22, %v839_v26 }
  0xf6   : > { %v842_v28 = vmax.f32 %v526_v23, 0.0 }
  0xf7   : > { %v841_v29 = vmax.f32 %v521_v27, 0.0  ;;  %v2724_v30 = vpop.f32.mrb[4].mxu0 }
  0xf8   : > { %v934_v34 = vmul.f32 %v3390_v24, %v842_v28  ;;  %v536_v35 = vadd.f32 %v2724_v30, %v3372_v11  ;;  %v530_v36 = vpop.f32.mrb[5].mxu0 }
  0xf9   : > { %v933_v39 = vmul.f32 %v3390_v24, %v841_v29  ;;  %v531_v40 = vadd.f32 %v530_v36, %v3372_v11 }
  0xfa   : > { %v936_v41 = vadd.f32 %v934_v34, %v932_v33  ;;  %v844_v42 = vmax.f32 %v536_v35, 0.0 }
  0xfb   : > { %v935_v43 = vadd.f32 %v933_v39, %v931_v38  ;;  %v843_v44 = vmax.f32 %v531_v40, 0.0  ;;  %v2727_v45 = vpop.f32.mrb[6].mxu0 }
  0xfc   : > { %v938_v47 = vmul.f32 %v3396_v32, %v844_v42  ;;  %v546_v48 = vadd.f32 %v2727_v45, %v3372_v11  ;;  %v540_v50 = vpop.f32.mrb[7].mxu0  ;;  %v1002_v61 = vmul.f32 %v3407_v46, %v844_v42 }
  0xfd   : > { %v937_v51 = vmul.f32 %v3396_v32, %v843_v44  ;;  %v541_v52 = vadd.f32 %v540_v50, %v3372_v11  ;;  %v1001_v2 = vmul.f32 %v3407_v46, %v843_v44 }
  0xfe   : > { %v940_v53 = vadd.f32 %v938_v47, %v936_v41  ;;  %v846_v54 = vmax.f32 %v546_v48, 0.0 }
  0xff   : > { %v939_v57 = vadd.f32 %v937_v51, %v935_v43  ;;  %v845_v58 = vmax.f32 %v541_v52, 0.0  ;;  %v2730_v60 = vpop.f32.mrb[8].mxu0 }
 0x100   : > { %v1004_v62 = vmul.f32 %v3412_v49, %v846_v54  ;;  %v556_v63 = vadd.f32 %v2730_v60, %v3372_v11  ;;  %v550_v0 = vpop.f32.mrb[9].mxu0 }
 0x101   : > { %v941_v1 = vpack.c.bf16 %v940_v53, %v939_v57  ;;  %v1003_v3 = vmul.f32 %v3412_v49, %v845_v58  ;;  %v551_v4 = vadd.f32 %v550_v0, %v3372_v11 }
 0x102   : > { %v1006_v5 = vadd.f32 %v1004_v62, %v1002_v61  ;;  %v848_v6 = vmax.f32 %v556_v63, 0.0 }
 0x103   : > { %v1005_v7 = vadd.f32 %v1003_v3, %v1001_v2  ;;  %v847_v8 = vmax.f32 %v551_v4, 0.0  ;;  %v2733_v9 = vpop.f32.mrb[10].mxu0  ;;  %2820 = vmatmul.mubr.msk.bf16.vlgmr.msra.gmra.mrb[0].mxu1 %vm954_vm3, %v941_v1 }
 0x104   : > { %v1008_v10 = vmul.f32 %v3386_v22, %v848_v6  ;;  %v566_v12 = vadd.f32 %v2733_v9, %v3372_v11  ;;  %v560_v13 = vpop.f32.mrb[11].mxu0  ;;  %2824 = vmatpush3.bf16.msra.mxu1 %v3323_v55  ;;  %2827 = vmatprep.mubr.msk.bf16.mxu1 %vm3131_vm2, %v3130_v56 }
 0x105   : > { %v1007_v15 = vmul.f32 %v3386_v22, %v847_v8  ;;  %v561_v17 = vadd.f32 %v560_v13, %v3372_v11  ;;  %2825 = vmatprep.subr.bf16.mxu1 %v3130_v56 }
 0x106   : > { %v1010_v18 = vadd.f32 %v1008_v10, %v1006_v5  ;;  %v850_v19 = vmax.f32 %v566_v12, 0.0 }
 0x107   : > { %v1009_v21 = vadd.f32 %v1007_v15, %v1005_v7  ;;  %v849_v23 = vmax.f32 %v561_v17, 0.0  ;;  %v2736_v25 = vpop.f32.mrb[12].mxu0 }
 0x108   : > { %v1012_v26 = vmul.f32 %v3390_v24, %v850_v19  ;;  %v576_v27 = vadd.f32 %v2736_v25, %v3372_v11  ;;  %v570_v28 = vpop.f32.mrb[13].mxu0  ;;  %2826 = vmatpush3.bf16.msra.mxu1 %v3335_v59 }
 0x109   : > { %v1011_v29 = vmul.f32 %v3390_v24, %v849_v23  ;;  %v571_v30 = vadd.f32 %v570_v28, %v3372_v11  ;;  %2831 = vmatprep.subr.bf16.mxu1 %v3130_v56 }
 0x10a   : > { %v1014_v33 = vadd.f32 %v1012_v26, %v1010_v18  ;;  %v852_v34 = vmax.f32 %v576_v27, 0.0 }
 0x10b   : > { %v1013_v35 = vadd.f32 %v1011_v29, %v1009_v21  ;;  %v851_v36 = vmax.f32 %v571_v30, 0.0  ;;  %v2739_v38 = vpop.f32.mrb[14].mxu0 }
 0x10c   : > { %v1016_v39 = vmul.f32 %v3396_v32, %v852_v34  ;;  %v586_v40 = vadd.f32 %v2739_v38, %v3372_v11  ;;  %v580_v41 = vpop.f32.mrb[15].mxu0  ;;  %v1067_v51 = vmul.f32 %v3407_v46, %v852_v34 }
 0x10d   : > { %v1015_v42 = vmul.f32 %v3396_v32, %v851_v36  ;;  %v581_v43 = vadd.f32 %v580_v41, %v3372_v11  ;;  %v1066_v58 = vmul.f32 %v3407_v46, %v851_v36 }
 0x10e   : > { %v1018_v44 = vadd.f32 %v1016_v39, %v1014_v33  ;;  %v854_v45 = vmax.f32 %v586_v40, 0.0 }
 0x10f   : > { %v1017_v47 = vadd.f32 %v1015_v42, %v1013_v35  ;;  %v853_v48 = vmax.f32 %v581_v43, 0.0  ;;  %v2742_v50 = vpop.f32.mrb[16].mxu0 }
 0x110   : > { %v1069_v52 = vmul.f32 %v3412_v49, %v854_v45  ;;  %v596_v53 = vadd.f32 %v2742_v50, %v3372_v11  ;;  %v590_v54 = vpop.f32.mrb[17].mxu0 }
 0x111   : > { %v1019_v57 = vpack.c.bf16 %v1018_v44, %v1017_v47  ;;  %v1068_v60 = vmul.f32 %v3412_v49, %v853_v48  ;;  %v591_v61 = vadd.f32 %v590_v54, %v3372_v11 }
 0x112   : > { %v1071_v62 = vadd.f32 %v1069_v52, %v1067_v51  ;;  %v856_v63 = vmax.f32 %v596_v53, 0.0 }
 0x113   : > { %v1070_v0 = vadd.f32 %v1068_v60, %v1066_v58  ;;  %v855_v1 = vmax.f32 %v591_v61, 0.0  ;;  %v2745_v2 = vpop.f32.mrb[18].mxu0  ;;  %2828 = vmatmul.mubr.msk.bf16.vlgmr.msra.gmra.mrb[4].mxu1 %vm954_vm3, %v1019_v57 }
 0x114   : > { %v1073_v3 = vmul.f32 %v3386_v22, %v856_v63  ;;  %v606_v4 = vadd.f32 %v2745_v2, %v3372_v11  ;;  %v600_v5 = vpop.f32.mrb[19].mxu0  ;;  %2832 = vmatpush3.bf16.msra.mxu1 %v3323_v55  ;;  %2835 = vmatprep.mubr.msk.bf16.mxu1 %vm3131_vm2, %v3130_v56 }
 0x115   : > { %v1072_v6 = vmul.f32 %v3386_v22, %v855_v1  ;;  %v601_v7 = vadd.f32 %v600_v5, %v3372_v11  ;;  %2833 = vmatprep.subr.bf16.mxu1 %v3130_v56 }
 0x116   : > { %v1075_v8 = vadd.f32 %v1073_v3, %v1071_v62  ;;  %v858_v9 = vmax.f32 %v606_v4, 0.0 }
 0x117   : > { %v1074_v10 = vadd.f32 %v1072_v6, %v1070_v0  ;;  %v857_v12 = vmax.f32 %v601_v7, 0.0  ;;  %v2748_v13 = vpop.f32.mrb[20].mxu0 }
 0x118   : > { %v1077_v15 = vmul.f32 %v3390_v24, %v858_v9  ;;  %v616_v17 = vadd.f32 %v2748_v13, %v3372_v11  ;;  %v610_v18 = vpop.f32.mrb[21].mxu0  ;;  %2834 = vmatpush3.bf16.msra.mxu1 %v3335_v59 }
 0x119   : > { %v1076_v19 = vmul.f32 %v3390_v24, %v857_v12  ;;  %v611_v21 = vadd.f32 %v610_v18, %v3372_v11  ;;  %2839 = vmatprep.subr.bf16.mxu1 %v3130_v56 }
 0x11a   : > { %v1079_v23 = vadd.f32 %v1077_v15, %v1075_v8  ;;  %v860_v25 = vmax.f32 %v616_v17, 0.0 }
 0x11b   : > { %v1078_v26 = vadd.f32 %v1076_v19, %v1074_v10  ;;  %v859_v27 = vmax.f32 %v611_v21, 0.0  ;;  %v2751_v28 = vpop.f32.mrb[22].mxu0 }
 0x11c   : > { %v1081_v29 = vmul.f32 %v3396_v32, %v860_v25  ;;  %v626_v30 = vadd.f32 %v2751_v28, %v3372_v11  ;;  %v620_v33 = vpop.f32.mrb[23].mxu0  ;;  %v1132_v42 = vmul.f32 %v3407_v46, %v860_v25 }
 0x11d   : > { %v1080_v34 = vmul.f32 %v3396_v32, %v859_v27  ;;  %v621_v35 = vadd.f32 %v620_v33, %v3372_v11  ;;  %v1131_v48 = vmul.f32 %v3407_v46, %v859_v27 }
 0x11e   : > { %v1083_v36 = vadd.f32 %v1081_v29, %v1079_v23  ;;  %v862_v38 = vmax.f32 %v626_v30, 0.0 }
 0x11f   : > { %v1082_v39 = vadd.f32 %v1080_v34, %v1078_v26  ;;  %v861_v40 = vmax.f32 %v621_v35, 0.0  ;;  %v2754_v41 = vpop.f32.mrb[24].mxu0 }
 0x120   : > { %v1134_v43 = vmul.f32 %v3412_v49, %v862_v38  ;;  %v636_v44 = vadd.f32 %v2754_v41, %v3372_v11  ;;  %v630_v45 = vpop.f32.mrb[25].mxu0 }
 0x121   : > { %v1084_v47 = vpack.c.bf16 %v1083_v36, %v1082_v39  ;;  %v1133_v50 = vmul.f32 %v3412_v49, %v861_v40  ;;  %v631_v51 = vadd.f32 %v630_v45, %v3372_v11 }
 0x122   : > { %v1136_v52 = vadd.f32 %v1134_v43, %v1132_v42  ;;  %v864_v53 = vmax.f32 %v636_v44, 0.0 }
 0x123   : > { %v1135_v54 = vadd.f32 %v1133_v50, %v1131_v48  ;;  %v863_v57 = vmax.f32 %v631_v51, 0.0  ;;  %v2757_v58 = vpop.f32.mrb[26].mxu0  ;;  %2836 = vmatmul.mubr.msk.bf16.vlgmr.msra.gmra.mrb[8].mxu1 %vm954_vm3, %v1084_v47 }
 0x124   : > { %v1138_v60 = vmul.f32 %v3386_v22, %v864_v53  ;;  %v646_v61 = vadd.f32 %v2757_v58, %v3372_v11  ;;  %v640_v62 = vpop.f32.mrb[27].mxu0  ;;  %2840 = vmatpush3.bf16.msra.mxu1 %v3323_v55  ;;  %2843 = vmatprep.mubr.msk.bf16.mxu1 %vm3131_vm2, %v3130_v56 }
 0x125   : > { %v1137_v63 = vmul.f32 %v3386_v22, %v863_v57  ;;  %v641_v0 = vadd.f32 %v640_v62, %v3372_v11  ;;  %2841 = vmatprep.subr.bf16.mxu1 %v3130_v56 }
 0x126   : > { %v1140_v1 = vadd.f32 %v1138_v60, %v1136_v52  ;;  %v866_v2 = vmax.f32 %v646_v61, 0.0 }
 0x127   : > { %v1139_v3 = vadd.f32 %v1137_v63, %v1135_v54  ;;  %v865_v4 = vmax.f32 %v641_v0, 0.0  ;;  %v2760_v5 = vpop.f32.mrb[28].mxu0 }
 0x128   : > { %v1142_v6 = vmul.f32 %v3390_v24, %v866_v2  ;;  %v656_v7 = vadd.f32 %v2760_v5, %v3372_v11  ;;  %v650_v8 = vpop.f32.mrb[29].mxu0  ;;  %2842 = vmatpush3.bf16.msra.mxu1 %v3335_v59 }
 0x129   : > { %v1141_v9 = vmul.f32 %v3390_v24, %v865_v4  ;;  %v651_v10 = vadd.f32 %v650_v8, %v3372_v11  ;;  %2847 = vmatprep.subr.bf16.mxu1 %v3130_v56 }
 0x12a   : > { %v1144_v12 = vadd.f32 %v1142_v6, %v1140_v1  ;;  %v868_v13 = vmax.f32 %v656_v7, 0.0 }
 0x12b   : > { %v1143_v15 = vadd.f32 %v1141_v9, %v1139_v3  ;;  %v867_v17 = vmax.f32 %v651_v10, 0.0  ;;  %v2763_v18 = vpop.f32.mrb[30].mxu0 }
 0x12c   : > { %v1146_v19 = vmul.f32 %v3396_v32, %v868_v13  ;;  %v666_v21 = vadd.f32 %v2763_v18, %v3372_v11  ;;  %v660_v23 = vpop.f32.mrb[31].mxu0  ;;  %v1197_v34 = vmul.f32 %v3407_v46, %v868_v13 }
 0x12d   : > { %v1145_v25 = vmul.f32 %v3396_v32, %v867_v17  ;;  %v661_v26 = vadd.f32 %v660_v23, %v3372_v11  ;;  %v1196_v40 = vmul.f32 %v3407_v46, %v867_v17 }
 0x12e   : > { %v1148_v27 = vadd.f32 %v1146_v19, %v1144_v12  ;;  %v870_v28 = vmax.f32 %v666_v21, 0.0 }
 0x12f   : > { %v1147_v29 = vadd.f32 %v1145_v25, %v1143_v15  ;;  %v869_v30 = vmax.f32 %v661_v26, 0.0  ;;  %v2766_v33 = vpop.f32.mrb[32].mxu0 }
 0x130   : > { %v1199_v35 = vmul.f32 %v3412_v49, %v870_v28  ;;  %v676_v36 = vadd.f32 %v2766_v33, %v3372_v11  ;;  %v670_v38 = vpop.f32.mrb[33].mxu0 }
 0x131   : > { %v1149_v39 = vpack.c.bf16 %v1148_v27, %v1147_v29  ;;  %v1198_v41 = vmul.f32 %v3412_v49, %v869_v30  ;;  %v671_v42 = vadd.f32 %v670_v38, %v3372_v11 }
 0x132   : > { %v1201_v43 = vadd.f32 %v1199_v35, %v1197_v34  ;;  %v872_v44 = vmax.f32 %v676_v36, 0.0 }
 0x133   : > { %v1200_v45 = vadd.f32 %v1198_v41, %v1196_v40  ;;  %v871_v47 = vmax.f32 %v671_v42, 0.0  ;;  %v2769_v48 = vpop.f32.mrb[34].mxu0  ;;  %2844 = vmatmul.mubr.msk.bf16.vlgmr.msra.gmra.mrb[12].mxu1 %vm954_vm3, %v1149_v39 }
 0x134   : > { %v1203_v50 = vmul.f32 %v3386_v22, %v872_v44  ;;  %v686_v51 = vadd.f32 %v2769_v48, %v3372_v11  ;;  %v680_v52 = vpop.f32.mrb[35].mxu0  ;;  %2848 = vmatpush3.bf16.msra.mxu1 %v3323_v55  ;;  %2851 = vmatprep.mubr.msk.bf16.mxu1 %vm3131_vm2, %v3130_v56 }
 0x135   : > { %v1202_v53 = vmul.f32 %v3386_v22, %v871_v47  ;;  %v681_v54 = vadd.f32 %v680_v52, %v3372_v11  ;;  %2849 = vmatprep.subr.bf16.mxu1 %v3130_v56 }
 0x136   : > { %v1205_v57 = vadd.f32 %v1203_v50, %v1201_v43  ;;  %v874_v58 = vmax.f32 %v686_v51, 0.0 }
 0x137   : > { %v1204_v60 = vadd.f32 %v1202_v53, %v1200_v45  ;;  %v873_v61 = vmax.f32 %v681_v54, 0.0  ;;  %v2772_v62 = vpop.f32.mrb[36].mxu0 }
 0x138   : > { %v1207_v63 = vmul.f32 %v3390_v24, %v874_v58  ;;  %v696_v0 = vadd.f32 %v2772_v62, %v3372_v11  ;;  %v690_v1 = vpop.f32.mrb[37].mxu0  ;;  %2850 = vmatpush3.bf16.msra.mxu1 %v3335_v59 }
 0x139   : > { %v1206_v2 = vmul.f32 %v3390_v24, %v873_v61  ;;  %v691_v3 = vadd.f32 %v690_v1, %v3372_v11  ;;  %2855 = vmatprep.subr.bf16.mxu1 %v3130_v56 }
 0x13a   : > { %v1209_v4 = vadd.f32 %v1207_v63, %v1205_v57  ;;  %v876_v5 = vmax.f32 %v696_v0, 0.0 }
 0x13b   : > { %v1208_v6 = vadd.f32 %v1206_v2, %v1204_v60  ;;  %v875_v7 = vmax.f32 %v691_v3, 0.0  ;;  %v2775_v8 = vpop.f32.mrb[38].mxu0 }
 0x13c   : > { %v1211_v9 = vmul.f32 %v3396_v32, %v876_v5  ;;  %v706_v10 = vadd.f32 %v2775_v8, %v3372_v11  ;;  %v700_v12 = vpop.f32.mrb[39].mxu0  ;;  %v1262_v25 = vmul.f32 %v3407_v46, %v876_v5 }
 0x13d   : > { %v1210_v13 = vmul.f32 %v3396_v32, %v875_v7  ;;  %v701_v15 = vadd.f32 %v700_v12, %v3372_v11  ;;  %v1261_v30 = vmul.f32 %v3407_v46, %v875_v7 }
 0x13e   : > { %v1213_v17 = vadd.f32 %v1211_v9, %v1209_v4  ;;  %v878_v18 = vmax.f32 %v706_v10, 0.0 }
 0x13f   : > { %v1212_v19 = vadd.f32 %v1210_v13, %v1208_v6  ;;  %v877_v21 = vmax.f32 %v701_v15, 0.0  ;;  %v2778_v23 = vpop.f32.mrb[40].mxu0 }
 0x140   : > { %v1264_v26 = vmul.f32 %v3412_v49, %v878_v18  ;;  %v716_v27 = vadd.f32 %v2778_v23, %v3372_v11  ;;  %v710_v28 = vpop.f32.mrb[41].mxu0 }
 0x141   : > { %v1214_v29 = vpack.c.bf16 %v1213_v17, %v1212_v19  ;;  %v1263_v33 = vmul.f32 %v3412_v49, %v877_v21  ;;  %v711_v34 = vadd.f32 %v710_v28, %v3372_v11 }
 0x142   : > { %v1266_v35 = vadd.f32 %v1264_v26, %v1262_v25  ;;  %v880_v36 = vmax.f32 %v716_v27, 0.0 }
 0x143   : > { %v1265_v38 = vadd.f32 %v1263_v33, %v1261_v30  ;;  %v879_v39 = vmax.f32 %v711_v34, 0.0  ;;  %v2781_v40 = vpop.f32.mrb[42].mxu0  ;;  %2852 = vmatmul.mubr.msk.bf16.vlgmr.msra.gmra.mrb[16].mxu1 %vm954_vm3, %v1214_v29 }
 0x144   : > { %v1268_v41 = vmul.f32 %v3386_v22, %v880_v36  ;;  %v726_v42 = vadd.f32 %v2781_v40, %v3372_v11  ;;  %v720_v43 = vpop.f32.mrb[43].mxu0  ;;  %2856 = vmatpush3.bf16.msra.mxu1 %v3323_v55  ;;  %2859 = vmatprep.mubr.msk.bf16.mxu1 %vm3131_vm2, %v3130_v56 }
 0x145   : > { %v1267_v44 = vmul.f32 %v3386_v22, %v879_v39  ;;  %v721_v45 = vadd.f32 %v720_v43, %v3372_v11  ;;  %2857 = vmatprep.subr.bf16.mxu1 %v3130_v56 }
 0x146   : > { %v1270_v47 = vadd.f32 %v1268_v41, %v1266_v35  ;;  %v882_v48 = vmax.f32 %v726_v42, 0.0 }
 0x147   : > { %v1269_v50 = vadd.f32 %v1267_v44, %v1265_v38  ;;  %v881_v51 = vmax.f32 %v721_v45, 0.0  ;;  %v2784_v52 = vpop.f32.mrb[44].mxu0 }
 0x148   : > { %v1272_v53 = vmul.f32 %v3390_v24, %v882_v48  ;;  %v736_v54 = vadd.f32 %v2784_v52, %v3372_v11  ;;  %v730_v57 = vpop.f32.mrb[45].mxu0  ;;  %2858 = vmatpush3.bf16.msra.mxu1 %v3335_v59 }
 0x149   : > { %v1271_v58 = vmul.f32 %v3390_v24, %v881_v51  ;;  %v731_v60 = vadd.f32 %v730_v57, %v3372_v11  ;;  %2863 = vmatprep.subr.bf16.mxu1 %v3130_v56 }
 0x14a   : > { %v1274_v61 = vadd.f32 %v1272_v53, %v1270_v47  ;;  %v884_v62 = vmax.f32 %v736_v54, 0.0 }
 0x14b   : > { %v1273_v63 = vadd.f32 %v1271_v58, %v1269_v50  ;;  %v883_v0 = vmax.f32 %v731_v60, 0.0  ;;  %v2787_v1 = vpop.f32.mrb[46].mxu0 }
 0x14c   : > { %v1276_v2 = vmul.f32 %v3396_v32, %v884_v62  ;;  %v746_v3 = vadd.f32 %v2787_v1, %v3372_v11  ;;  %v740_v4 = vpop.f32.mrb[47].mxu0  ;;  %v1327_v13 = vmul.f32 %v3407_v46, %v884_v62 }
 0x14d   : > { %v1275_v5 = vmul.f32 %v3396_v32, %v883_v0  ;;  %v741_v6 = vadd.f32 %v740_v4, %v3372_v11  ;;  %v1326_v21 = vmul.f32 %v3407_v46, %v883_v0 }
 0x14e   : > { %v1278_v7 = vadd.f32 %v1276_v2, %v1274_v61  ;;  %v886_v8 = vmax.f32 %v746_v3, 0.0 }
 0x14f   : > { %v1277_v9 = vadd.f32 %v1275_v5, %v1273_v63  ;;  %v885_v10 = vmax.f32 %v741_v6, 0.0  ;;  %v2790_v12 = vpop.f32.mrb[48].mxu0 }
 0x150   : > { %v1329_v15 = vmul.f32 %v3412_v49, %v886_v8  ;;  %v756_v17 = vadd.f32 %v2790_v12, %v3372_v11  ;;  %v750_v18 = vpop.f32.mrb[49].mxu0 }
 0x151   : > { %v1279_v19 = vpack.c.bf16 %v1278_v7, %v1277_v9  ;;  %v1328_v23 = vmul.f32 %v3412_v49, %v885_v10  ;;  %v751_v25 = vadd.f32 %v750_v18, %v3372_v11 }
 0x152   : > { %v1331_v26 = vadd.f32 %v1329_v15, %v1327_v13  ;;  %v888_v27 = vmax.f32 %v756_v17, 0.0 }
 0x153   : > { %v1330_v28 = vadd.f32 %v1328_v23, %v1326_v21  ;;  %v887_v29 = vmax.f32 %v751_v25, 0.0  ;;  %v2793_v30 = vpop.f32.mrb[50].mxu0  ;;  %2860 = vmatmul.mubr.msk.bf16.vlgmr.msra.gmra.mrb[20].mxu1 %vm954_vm3, %v1279_v19 }
 0x154   : > { %v1333_v33 = vmul.f32 %v3386_v22, %v888_v27  ;;  %v766_v34 = vadd.f32 %v2793_v30, %v3372_v11  ;;  %v760_v35 = vpop.f32.mrb[51].mxu0  ;;  %2864 = vmatpush3.bf16.msra.mxu1 %v3323_v55  ;;  %2867 = vmatprep.mubr.msk.bf16.mxu1 %vm3131_vm2, %v3130_v56 }
 0x155   : > { %v1332_v36 = vmul.f32 %v3386_v22, %v887_v29  ;;  %v761_v38 = vadd.f32 %v760_v35, %v3372_v11  ;;  %2865 = vmatprep.subr.bf16.mxu1 %v3130_v56 }
 0x156   : > { %v1335_v39 = vadd.f32 %v1333_v33, %v1331_v26  ;;  %v890_v40 = vmax.f32 %v766_v34, 0.0 }
 0x157   : > { %v1334_v41 = vadd.f32 %v1332_v36, %v1330_v28  ;;  %v889_v42 = vmax.f32 %v761_v38, 0.0  ;;  %v2796_v43 = vpop.f32.mrb[52].mxu0 }
 0x158   : > { %v1337_v44 = vmul.f32 %v3390_v24, %v890_v40  ;;  %v776_v45 = vadd.f32 %v2796_v43, %v3372_v11  ;;  %v770_v47 = vpop.f32.mrb[53].mxu0  ;;  %2866 = vmatpush3.bf16.msra.mxu1 %v3335_v59 }
 0x159   : > { %v1336_v48 = vmul.f32 %v3390_v24, %v889_v42  ;;  %v771_v50 = vadd.f32 %v770_v47, %v3372_v11  ;;  %2871 = vmatprep.subr.bf16.mxu1 %v3130_v56 }
 0x15a   : > { %v1339_v51 = vadd.f32 %v1337_v44, %v1335_v39  ;;  %v892_v52 = vmax.f32 %v776_v45, 0.0 }
 0x15b   : > { %v1338_v53 = vadd.f32 %v1336_v48, %v1334_v41  ;;  %v891_v54 = vmax.f32 %v771_v50, 0.0  ;;  %v2799_v57 = vpop.f32.mrb[54].mxu0 }
 0x15c   : > { %v1341_v58 = vmul.f32 %v3396_v32, %v892_v52  ;;  %v786_v60 = vadd.f32 %v2799_v57, %v3372_v11  ;;  %v780_v61 = vpop.f32.mrb[55].mxu0  ;;  %v1392_v5 = vmul.f32 %v3407_v46, %v892_v52 }
 0x15d   : > { %v1340_v62 = vmul.f32 %v3396_v32, %v891_v54  ;;  %v781_v63 = vadd.f32 %v780_v61, %v3372_v11  ;;  %v1391_v10 = vmul.f32 %v3407_v46, %v891_v54 }
 0x15e   : > { %v1343_v0 = vadd.f32 %v1341_v58, %v1339_v51  ;;  %v894_v1 = vmax.f32 %v786_v60, 0.0 }
 0x15f   : > { %v1342_v2 = vadd.f32 %v1340_v62, %v1338_v53  ;;  %v893_v3 = vmax.f32 %v781_v63, 0.0  ;;  %v2802_v4 = vpop.f32.mrb[56].mxu0 }
 0x160   : > { %v1394_v6 = vmul.f32 %v3412_v49, %v894_v1  ;;  %v796_v7 = vadd.f32 %v2802_v4, %v3372_v11  ;;  %v790_v8 = vpop.f32.mrb[57].mxu0 }
 0x161   : > { %v1344_v9 = vpack.c.bf16 %v1343_v0, %v1342_v2  ;;  %v1393_v12 = vmul.f32 %v3412_v49, %v893_v3  ;;  %v791_v13 = vadd.f32 %v790_v8, %v3372_v11 }
 0x162   : > { %v1396_v15 = vadd.f32 %v1394_v6, %v1392_v5  ;;  %v896_v17 = vmax.f32 %v796_v7, 0.0 }
 0x163   : > { %v1395_v18 = vadd.f32 %v1393_v12, %v1391_v10  ;;  %v895_v19 = vmax.f32 %v791_v13, 0.0  ;;  %v2805_v21 = vpop.f32.mrb[58].mxu0  ;;  %2868 = vmatmul.mubr.msk.bf16.vlgmr.msra.gmra.mrb[24].mxu1 %vm954_vm3, %v1344_v9 }
 0x164   : > { %v1398_v23 = vmul.f32 %v3386_v22, %v896_v17  ;;  %v806_v25 = vadd.f32 %v2805_v21, %v3372_v11  ;;  %v800_v26 = vpop.f32.mrb[59].mxu0  ;;  %2872 = vmatpush3.bf16.msra.mxu1 %v3323_v55  ;;  %2875 = vmatprep.mubr.msk.bf16.mxu1 %vm3131_vm2, %v3130_v56  ;;  %v3019_v21 = vld [vmem:[%s3952_s1 + $0x74] ss:$8 sps:$4 sm:$0xff]  }
 0x165   : > { %v1397_v27 = vmul.f32 %v3386_v22, %v895_v19  ;;  %v801_v28 = vadd.f32 %v800_v26, %v3372_v11  ;;  %2873 = vmatprep.subr.bf16.mxu1 %v3130_v56  ;;  %v3016_v19 = vld [vmem:[%s3952_s1 + $0x64] ss:$8 sps:$4 sm:$0xff]  }
 0x166   : > { %v1400_v29 = vadd.f32 %v1398_v23, %v1396_v15  ;;  %v898_v30 = vmax.f32 %v806_v25, 0.0  ;;  %1880 = vmatprep.subr.bf16.mxu0 %v3016_v19  ;;  %v3017_v23 = vld [vmem:[%s3952_s1 + $0x70] ss:$8 sps:$4 sm:$0xff]  }
 0x167   : > { %v1399_v33 = vadd.f32 %v1397_v27, %v1395_v18  ;;  %v897_v34 = vmax.f32 %v801_v28, 0.0  ;;  %v2808_v35 = vpop.f32.mrb[60].mxu0  ;;  %v3014_v18 = vld [vmem:[%s3952_s1 + $0x60] ss:$8 sps:$4 sm:$0xff]   ;;  %v3652_v25 = vld [vmem:[%s3953_s2 + $0x50] ss:$0 sm:$0xff] }
 0x168   : > { %v1402_v36 = vmul.f32 %v3390_v24, %v898_v30  ;;  %v816_v38 = vadd.f32 %v2808_v35, %v3372_v11  ;;  %v810_v39 = vpop.f32.mrb[61].mxu0  ;;  %2874 = vmatpush3.bf16.msra.mxu1 %v3335_v59  ;;  %1881 = vmatpush1.bf16.msra.mxu0 %v3014_v18  ;;  %v1513_v27 = vld [vmem:[%s3953_s2 + $0x60] sm:$0x1f] }
 0x169   : > { %v1401_v40 = vmul.f32 %v3390_v24, %v897_v34  ;;  %v811_v41 = vadd.f32 %v810_v39, %v3372_v11  ;;  %2879 = vmatprep.subr.bf16.mxu1 %v3130_v56  ;;  %1882 = vmatprep.subr.bf16.mxu0 %v3019_v21  ;;  %v3664_v35 = vrot.slane %v1513_v27, %v3377_v16 }
 0x16a   : > { %v1404_v42 = vadd.f32 %v1402_v36, %v1400_v29  ;;  %v900_v43 = vmax.f32 %v816_v38, 0.0 }
 0x16b   : > { %v1403_v44 = vadd.f32 %v1401_v40, %v1399_v33  ;;  %v899_v45 = vmax.f32 %v811_v41, 0.0  ;;  %v2811_v47 = vpop.f32.mrb[62].mxu0  ;;  %v3660_v33 = vrot.slane %v1513_v27, %v3375_v14 }
 0x16c   : > { %v1406_v48 = vmul.f32 %v3396_v32, %v900_v43  ;;  %v826_v50 = vadd.f32 %v2811_v47, %v3372_v11  ;;  %v820_v51 = vpop.f32.mrb[63].mxu0  ;;  %v1457_v61 = vmul.f32 %v3407_v46, %v900_v43  ;;  %1883 = vmatpush1.bf16.msra.mxu0 %v3017_v23 }
 0x16d   : > { %v1405_v52 = vmul.f32 %v3396_v32, %v899_v45  ;;  %v821_v53 = vadd.f32 %v820_v51, %v3372_v11  ;;  %v1456_v2 = vmul.f32 %v3407_v46, %v899_v45 }
 0x16e   : > { %v1408_v54 = vadd.f32 %v1406_v48, %v1404_v42  ;;  %v902_v24 = vmax.f32 %v826_v50, 0.0 }
 0x16f   : > { %v1407_v57 = vadd.f32 %v1405_v52, %v1403_v44  ;;  %v901_v58 = vmax.f32 %v821_v53, 0.0  ;;  %v2814_v60 = vpop.f32.mrb[64].mxu0 }
 0x170   : > { %v1459_v62 = vmul.f32 %v3412_v49, %v902_v24  ;;  %v836_v63 = vadd.f32 %v2814_v60, %v3372_v11  ;;  %v830_v0 = vpop.f32.mrb[65].mxu0 }
 0x171   : > { %v1409_v1 = vpack.c.bf16 %v1408_v54, %v1407_v57  ;;  %v1458_v3 = vmul.f32 %v3412_v49, %v901_v58  ;;  %v831_v32 = vadd.f32 %v830_v0, %v3372_v11  ;;  %v3608_v11 = vld [vmem:[%s3952_s1 + $0x20] ss:$8 sps:$4 sm:$0xff]   ;;  %v3673_v54 = vrot.slane %v1513_v27, %v3383_v20 }
 0x172   : > { %v1461_v4 = vadd.f32 %v1459_v62, %v1457_v61  ;;  %v904_v5 = vmax.f32 %v836_v63, 0.0 }
 0x173   : > { %v1460_v6 = vadd.f32 %v1458_v3, %v1456_v2  ;;  %v903_v7 = vmax.f32 %v831_v32, 0.0  ;;  %2876 = vmatmul.mubr.msk.bf16.vlgmr.msra.gmra.mrb[28].mxu1 %vm954_vm3, %v1409_v1 }
 0x174   : > { %v1463_v8 = vmul.f32 %v3386_v22, %v904_v5  ;;  %2880 = vmatpush3.bf16.msra.mxu1 %v3323_v55  ;;  %2883 = vmatprep.mubr.msk.bf16.mxu1 %vm3131_vm2, %v3130_v56  ;;  %v3616_v55 = vld [vmem:[%s3952_s1 + $0x30] ss:$8 sps:$4 sm:$0xff]  }
 0x175   : > { %v1462_v9 = vmul.f32 %v3386_v22, %v903_v7  ;;  %2881 = vmatprep.subr.bf16.mxu1 %v3130_v56  ;;  %v3632_v22 = vld [vmem:[%s3952_s1 + $0x50] ss:$8 sps:$4 sm:$0xff]  }
 0x176   : > { %v1465_v46 = vadd.f32 %v1463_v8, %v1461_v4  ;;  %v3684_v4 = vrot.slane %v1513_v27, %v3393_v31 }
 0x177   : > { %v1464_v49 = vadd.f32 %v1462_v9, %v1460_v6  ;;  %v3688_v6 = vrot.slane %v1513_v27, %v3401_v37 }
 0x178   : > { %2882 = vmatpush3.bf16.msra.mxu1 %v3335_v59  ;;  %v3625_v59 = vld [vmem:[%s3952_s1 + $0x40] ss:$8 sps:$4 sm:$0xff]  }
 0x179   : > { %v1466_v10 = vpack.c.bf16 %v1465_v46, %v1464_v49  ;;  %2887 = vmatprep.subr.bf16.mxu1 %v3130_v56 }
 0x17b   : > { %2884 = vmatmul.mubr.msk.bf16.vlgmr.msra.gmra.mrb[32].mxu1 %vm954_vm3, %v1466_v10 }
 0x17c   : > { %2888 = vmatpush3.bf16.msra.mxu1 %v3608_v11  ;;  %2895 = vmatprep.mubr.msk.bf16.mxu1 %vm3131_vm2, %v3130_v56 }
 0x17d   : > { %2889 = vmatprep.subr.bf16.mxu1 %v3130_v56 }
 0x180   : > { %2890 = vmatpush3.bf16.msra.mxu1 %v3616_v55 }
 0x181   : > { %2891 = vmatprep.subr.bf16.mxu1 %v3130_v56 }
 0x184   : > { %2892 = vmatpush3.bf16.msra.mxu1 %v3625_v59 }
 0x185   : > { %2893 = vmatprep.subr.bf16.mxu1 %v3130_v56 }
 0x188   : > { %2894 = vmatpush3.bf16.msra.mxu1 %v3632_v22 }
 0x189   : > { %2899 = vmatprep.subr.bf16.mxu1 %v3130_v56 }
 0x1d6   : > { %v992_v12 = vpop.f32.mrb[0].mxu1 }
 0x1d7   : > { %v2821_v13 = vpop.f32.mrb[1].mxu1  ;;  %v993_v26 = vadd.f32 %v992_v12, %v3652_v25 }
 0x1d8   : > { %v995_v15 = vpop.f32.mrb[2].mxu1 }
 0x1d9   : > { %v2822_v17 = vpop.f32.mrb[3].mxu1  ;;  %v996_v28 = vadd.f32 %v995_v15, %v3652_v25  ;;  %v999_v30 = vmax.f32 %v993_v26, 0.0 }
 0x1db   : > { %v1000_v39 = vmax.f32 %v996_v28, 0.0  ;;  %v1543_v43 = vmul.f32 %v3660_v33, %v999_v30 }
 0x1dd   : > { %v1544_v47 = vmul.f32 %v3660_v33, %v1000_v39 }
 0x1e6   : > { %v1057_v29 = vpop.f32.mrb[4].mxu1 }
 0x1e7   : > { %v1058_v34 = vadd.f32 %v1057_v29, %v3652_v25  ;;  %v2829_v36 = vpop.f32.mrb[5].mxu1 }
 0x1e8   : > { %v1060_v38 = vpop.f32.mrb[6].mxu1 }
 0x1e9   : > { %v1064_v40 = vmax.f32 %v1058_v34, 0.0  ;;  %v1061_v41 = vadd.f32 %v1060_v38, %v3652_v25  ;;  %v2830_v42 = vpop.f32.mrb[7].mxu1 }
 0x1eb   : > { %v1545_v44 = vmul.f32 %v3664_v35, %v1064_v40  ;;  %v1065_v45 = vmax.f32 %v1061_v41, 0.0 }
 0x1ed   : > { %v1547_v48 = vadd.f32 %v1545_v44, %v1543_v43  ;;  %v1546_v50 = vmul.f32 %v3664_v35, %v1065_v45 }
 0x1ef   : > { %v1548_v51 = vadd.f32 %v1546_v50, %v1544_v47 }
 0x1f6   : > { %v1122_v52 = vpop.f32.mrb[8].mxu1 }
 0x1f7   : > { %v1123_v53 = vadd.f32 %v1122_v52, %v3652_v25  ;;  %v2837_v24 = vpop.f32.mrb[9].mxu1 }
 0x1f8   : > { %v1125_v57 = vpop.f32.mrb[10].mxu1 }
 0x1f9   : > { %v1129_v58 = vmax.f32 %v1123_v53, 0.0  ;;  %v1126_v60 = vadd.f32 %v1125_v57, %v3652_v25  ;;  %v2838_v61 = vpop.f32.mrb[11].mxu1 }
 0x1fb   : > { %v1549_v62 = vmul.f32 %v3673_v54, %v1129_v58  ;;  %v1130_v63 = vmax.f32 %v1126_v60, 0.0  ;;  %v1625_v10 = vmul.f32 %v3684_v4, %v1129_v58 }
 0x1fd   : > { %v1551_v0 = vadd.f32 %v1549_v62, %v1547_v48  ;;  %v1550_v1 = vmul.f32 %v3673_v54, %v1130_v63  ;;  %v1626_v15 = vmul.f32 %v3684_v4, %v1130_v63 }
 0x1ff   : > { %v1552_v2 = vadd.f32 %v1550_v1, %v1548_v51 }
 0x201   : > { %v1553_v3 = vpack.c.bf16 %v1552_v2, %v1551_v0 }
 0x203   : > { %2896 = vmatmul.mubr.msk.bf16.vlgmr.msra.gmra.mrb[36].mxu1 %vm1578_vm4, %v1553_v3 }
 0x204   : > { %2900 = vmatpush3.bf16.msra.mxu1 %v3608_v11  ;;  %2907 = vmatprep.mubr.msk.bf16.mxu1 %vm3131_vm2, %v3130_v56 }
 0x205   : > { %2901 = vmatprep.subr.bf16.mxu1 %v3130_v56 }
 0x206   : > { %v1187_v32 = vpop.f32.mrb[12].mxu1 }
 0x207   : > { %v1188_v5 = vadd.f32 %v1187_v32, %v3652_v25  ;;  %v2845_v7 = vpop.f32.mrb[13].mxu1 }
 0x208   : > { %v1190_v8 = vpop.f32.mrb[14].mxu1  ;;  %2902 = vmatpush3.bf16.msra.mxu1 %v3616_v55 }
 0x209   : > { %v1194_v9 = vmax.f32 %v1188_v5, 0.0  ;;  %v1191_v46 = vadd.f32 %v1190_v8, %v3652_v25  ;;  %v2846_v49 = vpop.f32.mrb[15].mxu1  ;;  %2903 = vmatprep.subr.bf16.mxu1 %v3130_v56 }
 0x20b   : > { %v1627_v12 = vmul.f32 %v3688_v6, %v1194_v9  ;;  %v1195_v13 = vmax.f32 %v1191_v46, 0.0 }
 0x20c   : > { %2904 = vmatpush3.bf16.msra.mxu1 %v3625_v59 }
 0x20d   : > { %v1629_v17 = vadd.f32 %v1627_v12, %v1625_v10  ;;  %v1628_v18 = vmul.f32 %v3688_v6, %v1195_v13  ;;  %2905 = vmatprep.subr.bf16.mxu1 %v3130_v56 }
 0x20f   : > { %v1630_v19 = vadd.f32 %v1628_v18, %v1626_v15 }
 0x210   : > { %2906 = vmatpush3.bf16.msra.mxu1 %v3632_v22 }
 0x211   : > { %2911 = vmatprep.subr.bf16.mxu1 %v3130_v56 }
 0x216   : > { %v1252_v21 = vpop.f32.mrb[16].mxu1 }
 0x217   : > { %v1253_v23 = vadd.f32 %v1252_v21, %v3652_v25  ;;  %v2853_v26 = vpop.f32.mrb[17].mxu1 }
 0x218   : > { %v1255_v27 = vpop.f32.mrb[18].mxu1 }
 0x219   : > { %v1259_v28 = vmax.f32 %v1253_v23, 0.0  ;;  %v1256_v29 = vadd.f32 %v1255_v27, %v3652_v25  ;;  %v2854_v30 = vpop.f32.mrb[19].mxu1 }
 0x21b   : > { %v1631_v34 = vmul.f32 %v3660_v33, %v1259_v28  ;;  %v1260_v36 = vmax.f32 %v1256_v29, 0.0 }
 0x21d   : > { %v1633_v38 = vadd.f32 %v1631_v34, %v1629_v17  ;;  %v1632_v39 = vmul.f32 %v3660_v33, %v1260_v36 }
 0x21f   : > { %v1634_v40 = vadd.f32 %v1632_v39, %v1630_v19  ;;  %v3028_v39 = vld [vmem:[%s3952_s1 + $0xa4] ss:$8 sps:$4 sm:$0xff]  }
 0x226   : > { %v1317_v41 = vpop.f32.mrb[20].mxu1 }
 0x227   : > { %v1318_v42 = vadd.f32 %v1317_v41, %v3652_v25  ;;  %v2861_v43 = vpop.f32.mrb[21].mxu1  ;;  %v3031_v41 = vld [vmem:[%s3952_s1 + $0xb4] ss:$8 sps:$4 sm:$0xff]  }
 0x228   : > { %v1320_v44 = vpop.f32.mrb[22].mxu1  ;;  %v3032_v43 = vld [vmem:[%s3952_s1 + $0xc0] ss:$8 sps:$4 sm:$0xff]  }
 0x229   : > { %v1324_v45 = vmax.f32 %v1318_v42, 0.0  ;;  %v1321_v47 = vadd.f32 %v1320_v44, %v3652_v25  ;;  %v2862_v48 = vpop.f32.mrb[23].mxu1  ;;  %v3029_v42 = vld [vmem:[%s3952_s1 + $0xb0] ss:$8 sps:$4 sm:$0xff]   ;;  %v3034_v44 = vld [vmem:[%s3952_s1 + $0xc4] ss:$8 sps:$4 sm:$0xff]  }
 0x22a   : > { %v3132_v48 = vmov 0  }
 0x22b   : > { %v1635_v50 = vmul.f32 %v3664_v35, %v1324_v45  ;;  %v1325_v51 = vmax.f32 %v1321_v47, 0.0  ;;  %v3037_v45 = vld [vmem:[%s3952_s1 + $0xd4] ss:$8 sps:$4 sm:$0xff]   ;;  %v3035_v47 = vld [vmem:[%s3952_s1 + $0xd0] ss:$8 sps:$4 sm:$0xff]   ;;  %1912 = vmatprep.mubr.bf16.mxu0 %v3132_v48 }
 0x22d   : > { %v1637_v52 = vadd.f32 %v1635_v50, %v1633_v38  ;;  %v1636_v53 = vmul.f32 %v3664_v35, %v1325_v51  ;;  %v3020_v38 = vld [vmem:[%s3952_s1 + $0x80] ss:$8 sps:$4 sm:$0xff]  }
 0x22e   : > { %v3038_v50 = vld [vmem:[%s3952_s1 + $0x160] ss:$8 sps:$4 sm:$0xff]  }
 0x22f   : > { %v1638_v24 = vadd.f32 %v1636_v53, %v1634_v40  ;;  %v3026_v40 = vld [vmem:[%s3952_s1 + $0xa0] ss:$8 sps:$4 sm:$0xff]   ;;  %v3041_v53 = vld [vmem:[%s3952_s1 + $0xf0] ss:$8 sps:$4 sm:$0xff]  }
 0x230   : > { %v3039_v51 = vld [vmem:[%s3952_s1 + $0xe0] ss:$8 sps:$4 sm:$0xff]  }
 0x236   : > { %v1382_v57 = vpop.f32.mrb[24].mxu1 }
 0x237   : > { %v1383_v58 = vadd.f32 %v1382_v57, %v3652_v25  ;;  %v2869_v60 = vpop.f32.mrb[25].mxu1  ;;  %v3043_v57 = vld [vmem:[%s3952_s1 + $0x100] ss:$8 sps:$4 sm:$0xff]  }
 0x238   : > { %v1385_v61 = vpop.f32.mrb[26].mxu1  ;;  %v3045_v60 = vld [vmem:[%s3952_s1 + $0x110] ss:$8 sps:$4 sm:$0xff]  }
 0x239   : > { %v1389_v62 = vmax.f32 %v1383_v58, 0.0  ;;  %v1386_v63 = vadd.f32 %v1385_v61, %v3652_v25  ;;  %v2870_v0 = vpop.f32.mrb[27].mxu1  ;;  %v3044_v58 = vld [vmem:[%s3952_s1 + $0x190] ss:$8 sps:$4 sm:$0xff]   ;;  %v3046_v61 = vld [vmem:[%s3952_s1 + $0x1a0] ss:$8 sps:$4 sm:$0xff]  }
 0x23b   : > { %v1639_v1 = vmul.f32 %v3673_v54, %v1389_v62  ;;  %v1390_v2 = vmax.f32 %v1386_v63, 0.0  ;;  %v3048_v63 = vld [vmem:[%s3952_s1 + $0x1b0] ss:$8 sps:$4 sm:$0xff]  }
 0x23d   : > { %v1641_v3 = vadd.f32 %v1639_v1, %v1637_v52  ;;  %v1640_v32 = vmul.f32 %v3673_v54, %v1390_v2  ;;  %v1691_v15 = vmul.f32 %v3684_v4, %v1390_v2  ;;  %v3040_v52 = vld [vmem:[%s3952_s1 + $0x170] ss:$8 sps:$4 sm:$0xff]  }
 0x23f   : > { %v1642_v5 = vadd.f32 %v1640_v32, %v1638_v24  ;;  %v3042_v24 = vld [vmem:[%s3952_s1 + $0x180] ss:$8 sps:$4 sm:$0xff]   ;;  %v1542_v32 = vld [vmem:[%s3953_s2 + $0x70] ss:$0 sm:$0xff] }
 0x241   : > { %v1643_v7 = vpack.c.bf16 %v1642_v5, %v1641_v3 }
 0x243   : > { %2908 = vmatmul.mubr.msk.bf16.vlgmr.msra.gmra.mrb[40].mxu1 %vm1578_vm4, %v1643_v7  ;;  %v1747_v7 = vld [vmem:[%s3953_s2 + $0x80] sm:$0x1f] }
 0x244   : > { %2912 = vmatpush3.bf16.msra.mxu1 %v3608_v11  ;;  %2919 = vmatprep.mubr.msk.bf16.mxu1 %vm3131_vm2, %v3130_v56  ;;  %v1690_v11 = vmul.f32 %v3684_v4, %v1389_v62  ;;  %v3047_v62 = vld [vmem:[%s3952_s1 + $0x120] ss:$8 sps:$4 sm:$0xff]  }
 0x245   : > { %2913 = vmatprep.subr.bf16.mxu1 %v3130_v56 }
 0x246   : > { %v1447_v35 = vpop.f32.mrb[28].mxu1 }
 0x247   : > { %v1448_v8 = vadd.f32 %v1447_v35, %v3652_v25  ;;  %v2877_v9 = vpop.f32.mrb[29].mxu1 }
 0x248   : > { %v1450_v46 = vpop.f32.mrb[30].mxu1  ;;  %2914 = vmatpush3.bf16.msra.mxu1 %v3616_v55 }
 0x249   : > { %v1454_v49 = vmax.f32 %v1448_v8, 0.0  ;;  %v1451_v54 = vadd.f32 %v1450_v46, %v3652_v25  ;;  %v2878_v10 = vpop.f32.mrb[31].mxu1  ;;  %2915 = vmatprep.subr.bf16.mxu1 %v3130_v56  ;;  %v1751_v46 = vrot.slane %v1747_v7, %v3375_v14  ;;  %v1759_v14 = vrot.slane %v1747_v7, %v3383_v20  ;;  %v3050_v20 = vld [vmem:[%s3952_s1 + $0x1c0] ss:$8 sps:$4 sm:$0xff]  }
 0x24b   : > { %v1692_v12 = vmul.f32 %v3688_v6, %v1454_v49  ;;  %v1455_v13 = vmax.f32 %v1451_v54, 0.0  ;;  %v1755_v54 = vrot.slane %v1747_v7, %v3377_v16  ;;  %v1959_v7 = vld [vmem:[%s3953_s2 + $0xa0] ss:$0 sm:$0xff] }
 0x24c   : > { %2916 = vmatpush3.bf16.msra.mxu1 %v3625_v59 }
 0x24d   : > { %v1694_v17 = vadd.f32 %v1692_v12, %v1690_v11  ;;  %v1693_v18 = vmul.f32 %v3688_v6, %v1455_v13  ;;  %2917 = vmatprep.subr.bf16.mxu1 %v3130_v56 }
 0x24e   : > { %v1504_v55 = vpop.f32.mrb[32].mxu1 }
 0x24f   : > { %v1695_v19 = vadd.f32 %v1693_v18, %v1691_v15  ;;  %v1505_v21 = vadd.f32 %v1504_v55, %v3652_v25  ;;  %v2885_v23 = vpop.f32.mrb[33].mxu1 }
 0x250   : > { %v1507_v26 = vpop.f32.mrb[34].mxu1  ;;  %2918 = vmatpush3.bf16.msra.mxu1 %v3632_v22  ;;  %v3022_v22 = vld [vmem:[%s3952_s1 + $0x84] ss:$8 sps:$4 sm:$0xff]  }
 0x251   : > { %v1511_v27 = vmax.f32 %v1505_v21, 0.0  ;;  %v1508_v28 = vadd.f32 %v1507_v26, %v3652_v25  ;;  %v2886_v29 = vpop.f32.mrb[35].mxu1  ;;  %1884 = vmatprep.subr.bf16.mxu0 %v3022_v22  ;;  %v3025_v25 = vld [vmem:[%s3952_s1 + $0x94] ss:$8 sps:$4 sm:$0xff]   ;;  %2673 = vmatprep.subr.bf16.mxu1 %v3038_v50 }
 0x252   : > { %1885 = vmatpush1.bf16.msra.mxu0 %v3020_v38 }
 0x253   : > { %v1696_v59 = vmul.f32 %v3660_v33, %v1511_v27  ;;  %v1512_v4 = vmax.f32 %v1508_v28, 0.0  ;;  %1886 = vmatprep.subr.bf16.mxu0 %v3025_v25 }
 0x255   : > { %v1698_v30 = vadd.f32 %v1696_v59, %v1694_v17  ;;  %v1697_v6 = vmul.f32 %v3660_v33, %v1512_v4  ;;  %v3023_v33 = vld [vmem:[%s3952_s1 + $0x90] ss:$8 sps:$4 sm:$0xff]  }
 0x256   : > { %1887 = vmatpush1.bf16.msra.mxu0 %v3023_v33 }
 0x257   : > { %v1699_v34 = vadd.f32 %v1697_v6, %v1695_v19  ;;  %1888 = vmatprep.subr.bf16.mxu0 %v3028_v39  ;;  %v3049_v39 = vld [vmem:[%s3952_s1 + $0x130] ss:$8 sps:$4 sm:$0xff]  }
 0x259   : > { %v1700_v36 = vpack.c.bf16 %v1699_v34, %v1698_v30 }
 0x25a   : > { %1889 = vmatpush1.bf16.msra.mxu0 %v3026_v40  ;;  %v3051_v40 = vld [vmem:[%s3952_s1 + $0x140] ss:$8 sps:$4 sm:$0xff]  }
 0x25b   : > { %2920 = vmatmul.mubr.msk.bf16.vlgmr.msra.gmra.mrb[44].mxu1 %vm1578_vm4, %v1700_v36  ;;  %1890 = vmatprep.subr.bf16.mxu0 %v3031_v41  ;;  %v3052_v41 = vld [vmem:[%s3952_s1 + $0x1d0] ss:$8 sps:$4 sm:$0xff]  }
 0x25c   : > { %2674 = vmatpush3.bf16.msra.mxu1 %v3039_v51 }
 0x25d   : > { %2675 = vmatprep.subr.bf16.mxu1 %v3040_v52 }
 0x25e   : > { %1891 = vmatpush1.bf16.msra.mxu0 %v3029_v42  ;;  %v3053_v42 = vld [vmem:[%s3952_s1 + $0x150] ss:$8 sps:$4 sm:$0xff]  }
 0x25f   : > { %1892 = vmatprep.subr.bf16.mxu0 %v3034_v44  ;;  %v2508_v44 = vld [vmem:[%s3953_s2 + $0x90] ss:$8 sm:$0x3] }
 0x260   : > { %2676 = vmatpush3.bf16.msra.mxu1 %v3041_v53 }
 0x261   : > { %2677 = vmatprep.subr.bf16.mxu1 %v3042_v24 }
 0x262   : > { %1893 = vmatpush1.bf16.msra.mxu0 %v3032_v43  ;;  %v3054_v43 = vld [vmem:[%s3952_s1 + $0x1e0] ss:$8 sps:$4 sm:$0xff]  }
 0x263   : > { %1894 = vmatprep.subr.bf16.mxu0 %v3037_v45  ;;  %v1782_v45 = vrot.slane %v2508_v44, %v3393_v31  ;;  %v3055_v31 = vld [vmem:[%s3952_s1 + $0x1f0] ss:$8 sps:$4 sm:$0xff]  }
 0x264   : > { %2678 = vmatpush3.bf16.msra.mxu1 %v3043_v57 }
 0x265   : > { %2679 = vmatprep.subr.bf16.mxu1 %v3044_v58 }
 0x266   : > { %1895 = vmatpush1.bf16.msra.mxu0 %v3035_v47  ;;  %v1786_v47 = vrot.slane %v2508_v44, %v3401_v37  ;;  %v3056_v37 = vld [vmem:[%s3952_s1 + $0x200] ss:$8 sps:$4 sm:$0xff]  }
 0x267   : > { %2923 = vmatprep.subr.bf16.mxu0 %v3130_v56 }
 0x268   : > { %2680 = vmatpush3.bf16.msra.mxu1 %v3045_v60 }
 0x269   : > { %2681 = vmatprep.subr.bf16.mxu1 %v3046_v61 }
 0x26c   : > { %2682 = vmatpush3.bf16.msra.mxu1 %v3047_v62 }
 0x26d   : > { %2683 = vmatprep.subr.bf16.mxu1 %v3048_v63 }
 0x270   : > { %2684 = vmatpush3.bf16.msra.mxu1 %v3049_v39 }
 0x271   : > { %2685 = vmatprep.subr.bf16.mxu1 %v3050_v20 }
 0x274   : > { %2686 = vmatpush3.bf16.msra.mxu1 %v3051_v40 }
 0x275   : > { %2687 = vmatprep.subr.bf16.mxu1 %v3052_v41 }
 0x278   : > { %2688 = vmatpush3.bf16.msra.mxu1 %v3053_v42 }
 0x279   : > { %2935 = vmatprep.subr.bf16.mxu1 %v3130_v56 }
 0x2d6   : > { %v1616_v0 = vpop.f32.mrb[36].mxu1 }
 0x2d7   : > { %v2897_v1 = vpop.f32.mrb[37].mxu1  ;;  %v1617_v5 = vadd.f32 %v1616_v0, %v1542_v32 }
 0x2d8   : > { %v1619_v2 = vpop.f32.mrb[38].mxu1 }
 0x2d9   : > { %v2898_v3 = vpop.f32.mrb[39].mxu1  ;;  %v1620_v35 = vadd.f32 %v1619_v2, %v1542_v32  ;;  %v1623_v9 = vmax.f32 %v1617_v5, 0.0  ;;  %v3057_v2 = vld [vmem:[%s3952_s1 + $0x210] ss:$8 sps:$4 sm:$0xff]  }
 0x2da   : > { %v3058_v3 = vld [vmem:[%s3952_s1 + $0x220] ss:$8 sps:$4 sm:$0xff]  }
 0x2db   : > { %v1624_v12 = vmax.f32 %v1620_v35, 0.0  ;;  %v1789_v18 = vmul.f32 %v1751_v46, %v1623_v9 }
 0x2dd   : > { %v1790_v21 = vmul.f32 %v1751_v46, %v1624_v12 }
 0x316   : > { %v1681_v8 = vpop.f32.mrb[40].mxu1 }
 0x317   : > { %v1682_v49 = vadd.f32 %v1681_v8, %v1542_v32  ;;  %v2909_v10 = vpop.f32.mrb[41].mxu1 }
 0x318   : > { %v1684_v11 = vpop.f32.mrb[42].mxu1 }
 0x319   : > { %v1688_v13 = vmax.f32 %v1682_v49, 0.0  ;;  %v1685_v15 = vadd.f32 %v1684_v11, %v1542_v32  ;;  %v2910_v17 = vpop.f32.mrb[43].mxu1 }
 0x31a   : > { %v3061_v17 = vld [vmem:[%s3952_s1 + $0x250] ss:$8 sps:$4 sm:$0xff]  }
 0x31b   : > { %v1791_v55 = vmul.f32 %v1755_v54, %v1688_v13  ;;  %v1689_v19 = vmax.f32 %v1685_v15, 0.0  ;;  %v3060_v15 = vld [vmem:[%s3952_s1 + $0x240] ss:$8 sps:$4 sm:$0xff]  }
 0x31d   : > { %v1793_v23 = vadd.f32 %v1791_v55, %v1789_v18  ;;  %v1792_v26 = vmul.f32 %v1755_v54, %v1689_v19  ;;  %v3062_v18 = vld [vmem:[%s3952_s1 + $0x260] ss:$8 sps:$4 sm:$0xff]   ;;  %v3063_v55 = vld [vmem:[%s3952_s1 + $0x270] ss:$8 sps:$4 sm:$0xff]  }
 0x31e   : > { %v2109_v19 = vld [vmem:[%s3953_s2 + $0xb0] ss:$0 sm:$0xff] }
 0x31f   : > { %v1794_v27 = vadd.f32 %v1792_v26, %v1790_v21 }
 0x32e   : > { %v1738_v28 = vpop.f32.mrb[44].mxu1 }
 0x32f   : > { %v1739_v29 = vadd.f32 %v1738_v28, %v1542_v32  ;;  %v2921_v59 = vpop.f32.mrb[45].mxu1 }
 0x330   : > { %v1741_v4 = vpop.f32.mrb[46].mxu1 }
 0x331   : > { %v1745_v16 = vmax.f32 %v1739_v29, 0.0  ;;  %v1742_v30 = vadd.f32 %v1741_v4, %v1542_v32  ;;  %v2922_v6 = vpop.f32.mrb[47].mxu1  ;;  %v3059_v32 = vld [vmem:[%s3952_s1 + $0x230] ss:$8 sps:$4 sm:$0xff]  }
 0x332   : > { %v2189_v6 = vld [vmem:[%s3953_s2 + $0xc0] ss:$0 sm:$0xff] }
 0x333   : > { %v1795_v34 = vmul.f32 %v1759_v14, %v1745_v16  ;;  %v1746_v36 = vmax.f32 %v1742_v30, 0.0  ;;  %v3064_v16 = vld [vmem:[%s3952_s1 + $0x280] ss:$8 sps:$4 sm:$0xff]   ;;  %v3065_v30 = vld [vmem:[%s3952_s1 + $0x290] ss:$8 sps:$4 sm:$0xff]  }
 0x335   : > { %v1797_v38 = vadd.f32 %v1795_v34, %v1793_v23  ;;  %v1796_v22 = vmul.f32 %v1759_v14, %v1746_v36 }
 0x337   : > { %v1798_v25 = vadd.f32 %v1796_v22, %v1794_v27 }
 0x339   : > { %v1799_v33 = vpack.c.bf16 %v1798_v25, %v1797_v38 }
 0x33b   : > { %1913 = vmatmul.mubr.bf16.vlgmr.msra.gmra.mrb[68].mxu0 %v1799_v33 }
 0x33c   : > { %2931 = vmatprep.mubr.msk.bf16.mxu0 %vm3131_vm2, %v3130_v56  ;;  %2924 = vmatpush3.bf16.msra.mxu0 %v3054_v43 }
 0x33d   : > { %2925 = vmatprep.subr.bf16.mxu0 %v3130_v56 }
 0x340   : > { %2926 = vmatpush3.bf16.msra.mxu0 %v3055_v31 }
 0x341   : > { %2927 = vmatprep.subr.bf16.mxu0 %v3130_v56 }
 0x344   : > { %2928 = vmatpush3.bf16.msra.mxu0 %v3056_v37 }
 0x345   : > { %2929 = vmatprep.subr.bf16.mxu0 %v3130_v56 }
 0x348   : > { %2930 = vmatpush3.bf16.msra.mxu0 %v3057_v2 }
 0x349   : > { %2947 = vmatprep.subr.bf16.mxu0 %v3130_v56 }
 0x40e   : > { %v1914_v48 = vpop.f32.mrb[68].mxu0 }
 0x40f   : > { %v1915_v50 = vadd.f32 %v1914_v48, %v1782_v45  ;;  %v1916_v51 = vpop.f32.mrb[69].mxu0 }
 0x410   : > { %v1917_v52 = vadd.f32 %v1916_v51, %v1786_v47  ;;  %v1918_v53 = vpop.f32.mrb[70].mxu0 }
 0x411   : > { %v1919_v24 = vadd.f32 %v1918_v53, %v1782_v45  ;;  %v1920_v57 = vpop.f32.mrb[71].mxu0  ;;  %v1923_v60 = vmax.f32 %v1915_v50, 0.0 }
 0x412   : > { %v1921_v58 = vadd.f32 %v1920_v57, %v1786_v47  ;;  %v1924_v62 = vmax.f32 %v1917_v52, 0.0 }
 0x413   : > { %v1925_v61 = vmax.f32 %v1919_v24, 0.0 }
 0x414   : > { %v1926_v63 = vmax.f32 %v1921_v58, 0.0 }
 0x415   : > { %v1960_v0 = vpack.c.bf16 %v1925_v61, %v1923_v60 }
 0x416   : > { %v1961_v1 = vpack.c.bf16 %v1926_v63, %v1924_v62 }
 0x418   : > { %2090 = vmatprep.mubr.bf16.mxu1 %v1961_v1 }
 0x419   : > { %2091 = vmatmul.mubr.bf16.vlgmr.msra.gmra.mrb[48].mxu1 %v1960_v0 }
 0x41a   : > { %2943 = vmatprep.mubr.msk.bf16.mxu1 %vm3131_vm2, %v3130_v56  ;;  %2936 = vmatpush3.bf16.msra.mxu1 %v3058_v3 }
 0x41b   : > { %2937 = vmatprep.subr.bf16.mxu1 %v3130_v56 }
 0x41e   : > { %2938 = vmatpush3.bf16.msra.mxu1 %v3059_v32 }
 0x41f   : > { %2939 = vmatprep.subr.bf16.mxu1 %v3130_v56 }
 0x422   : > { %2940 = vmatpush3.bf16.msra.mxu1 %v3060_v15 }
 0x423   : > { %2941 = vmatprep.subr.bf16.mxu1 %v3130_v56 }
 0x426   : > { %2942 = vmatpush3.bf16.msra.mxu1 %v3061_v17 }
 0x4ec   : > { %v2689_v5 = vpop.f32.mrb[48].mxu1 }
 0x4ed   : > { %v2690_v35 = vpop.f32.mrb[49].mxu1 }
 0x4ee   : > { %v2691_v8 = vadd.f32 %v2690_v35, %v2689_v5  ;;  %v2692_v9 = vpop.f32.mrb[50].mxu1 }
 0x4ef   : > { %v2693_v46 = vpop.f32.mrb[51].mxu1 }
 0x4f0   : > { %v2093_v49 = vadd.f32 %v2691_v8, %v1959_v7  ;;  %v2694_v54 = vadd.f32 %v2693_v46, %v2692_v9 }
 0x4f2   : > { %v2096_v10 = vadd.f32 %v2694_v54, %v1959_v7  ;;  %v2099_v11 = vmax.f32 %v2093_v49, 0.0 }
 0x4f4   : > { %v2100_v12 = vmax.f32 %v2096_v10, 0.0 }
 0x4f6   : > { %v2110_v13 = vpack.c.bf16 %v2100_v12, %v2099_v11 }
 0x4f8   : > { %2932 = vmatmul.mubr.msk.bf16.vlgmr.msra.gmra.mrb[72].mxu0 %vm1578_vm4, %v2110_v13 }
 0x4f9   : > { %2955 = vmatprep.mubr.msk.bf16.mxu0 %vm3131_vm2, %v3130_v56  ;;  %2948 = vmatpush3.bf16.msra.mxu0 %v3062_v18 }
 0x4fa   : > { %2949 = vmatprep.subr.bf16.mxu0 %v3130_v56 }
 0x4fd   : > { %2950 = vmatpush3.bf16.msra.mxu0 %v3063_v55 }
 0x4fe   : > { %2951 = vmatprep.subr.bf16.mxu0 %v3130_v56 }
 0x501   : > { %2952 = vmatpush3.bf16.msra.mxu0 %v3064_v16 }
 0x502   : > { %2953 = vmatprep.subr.bf16.mxu0 %v3130_v56  ;;  %v2269_v56 = vld [vmem:[%s3953_s2 + $0xd0] ss:$0 sm:$0xff] }
 0x505   : > { %2954 = vmatpush3.bf16.msra.mxu0 %v3065_v30 }
 0x5cb   : > { %v2172_v21 = vpop.f32.mrb[72].mxu0 }
 0x5cc   : > { %v2173_v23 = vadd.f32 %v2172_v21, %v2109_v19  ;;  %v2933_v26 = vpop.f32.mrb[73].mxu0 }
 0x5cd   : > { %v2175_v27 = vpop.f32.mrb[74].mxu0 }
 0x5ce   : > { %v2176_v28 = vadd.f32 %v2175_v27, %v2109_v19  ;;  %v2934_v29 = vpop.f32.mrb[75].mxu0  ;;  %v2179_v14 = vmax.f32 %v2173_v23, 0.0 }
 0x5d0   : > { %v2180_v59 = vmax.f32 %v2176_v28, 0.0 }
 0x5d2   : > { %v2190_v4 = vpack.c.bf16 %v2180_v59, %v2179_v14 }
 0x5d4   : > { %2944 = vmatmul.mubr.msk.bf16.vlgmr.msra.gmra.mrb[52].mxu1 %vm1578_vm4, %v2190_v4 }
 0x6a7   : > { %v2252_v34 = vpop.f32.mrb[52].mxu1 }
 0x6a8   : > { %v2253_v36 = vadd.f32 %v2252_v34, %v2189_v6  ;;  %v2945_v38 = vpop.f32.mrb[53].mxu1 }
 0x6a9   : > { %v2255_v22 = vpop.f32.mrb[54].mxu1 }
 0x6aa   : > { %v2256_v25 = vadd.f32 %v2255_v22, %v2189_v6  ;;  %v2946_v33 = vpop.f32.mrb[55].mxu1  ;;  %v2259_v39 = vmax.f32 %v2253_v36, 0.0 }
 0x6ac   : > { %v2260_v20 = vmax.f32 %v2256_v25, 0.0 }
 0x6ae   : > { %v2270_v40 = vpack.c.bf16 %v2260_v20, %v2259_v39 }
 0x6b0   : > { %2956 = vmatmul.mubr.msk.bf16.vlgmr.msra.gmra.mrb[76].mxu0 %vm1578_vm4, %v2270_v40 }
 0x783   : > { %v2332_v41 = vpop.f32.mrb[76].mxu0 }
 0x784   : > { %v2333_v42 = vadd.f32 %v2332_v41, %v2269_v56  ;;  %v2957_v43 = vpop.f32.mrb[77].mxu0 }
 0x785   : > { %v2335_v44 = vpop.f32.mrb[78].mxu0 }
 0x786   : > { %2339 = vst [vmem:[%s163_s6] sm:$0xff] %v2333_v42  ;;  %v2336_v45 = vadd.f32 %v2335_v44, %v2269_v56  ;;  %v2958_v47 = vpop.f32.mrb[79].mxu0 }
 0x788   : > { %2340 = vst [vmem:[%s163_s6 + $0x8] sm:$0xff] %v2336_v45 }
 0x789   : > { %3079 = shalt.err (!%p3076_p3)
}
 0x78a   : > { %s3080_s25 = scalar_lea.hbm %s3908_s11, 256  ;;  %s3084_s28 = scalar_lea.hbm %s3954_s3, 512 }
 0x78b   : > { %p3081_p4 = scmp.ne.s32.totalorder %s3908_s11, %s3080_s25  ;;  %p3085_p9 = scmp.lt.u32.totalorder %s3908_s11, %s3954_s3 }
 0x78c   : > { %p3086_p10 = scmp.lt.u32.totalorder %s3084_s28, %s3080_s25  ;;  %p3088_p12 = scmp.lt.u32.totalorder %s3080_s25, %s3908_s11 }
 0x78d   : > { %p3082_p7 = pnand %p3081_p4, %p3194_p5 }
 0x78e   : > { %p3087_p11 = por %p3086_p10, %p3085_p9 }
 0x78f   : > { %p3083_p8 = pneg %p3082_p7 }
 0x790   : > { %p3089_p13 = por %p3088_p12, %p3087_p11 }
 0x792   : > { %p3090_p0 = pnand %p3089_p13, %p3083_p8 }
 0x794   : > { %3093 = shalt.err (!%p3090_p0)
}
 0x795   : > { %s3134_s4 = smov 128   ;;  %s3135_s5 = smov 8  }
 0x796   : > { %2964 = dma.vmem_to_hbm [thread:$0]  (%p3194_p5), %s3903_s7, 256, %s3908_s11, %s3910_s17, %s3134_s4, %s3134_s4, %s3135_s5  }
 0x797 PF: > { %p2970_p1 = scmp.ge.s32.totalorder %s3128_s15, 2  ;;  %s2370_s6 = sand.u32 1, %s3116_s12  }
 0x798   : > { %s2371_s8 = scalar_lea.sflag [#allocation3], %s2370_s6 }
 0x799   : > { %p2967_p2 = pnand %p2970_p1, %p3198_p6 }
 0x79b   : > { %3111 = dma.done.wait (!%p2967_p2), %s2371_s8, 256  }
 0x79c   : > { %3113 = vsyncadd (!%p2967_p2), %s2371_s8, 4294967040  ;;  %p13_p3 = scmp.ge.s32.totalorder %s3181_s18, 4   ;;  %s3957_s12 = smov %s3120_s13 }
 0x79d   : > { %s3958_s13 = smov %s3124_s14  ;;  %s3959_s14 = smov %s3192_s21 }
 0x79e   : > { %s3960_s15 = smov %s3181_s18  ;;  %15 = sbr.rel (!%p13_p3) target bundleno = 3 (0x3), region = 68 }
 0x7a5   :  { %2376 = vsyncpa [#allocation3], 1 }
 0x7a6   :  { %2378 = vsyncpa [#allocation3 + $0x1], 1 }

</bundles_post_ra>
